<compile_context>
chip_gen: v7x
topology: tpu7x:2x2x1
jax: 0.10.0
libtpu: 0.0.40
codegen_flags: <defaults>
</compile_context>

<pallas_src>
import functools
import math

import jax
import jax.numpy as jnp
from jax.experimental import pallas as pl
from jax.experimental.pallas import tpu as pltpu


def _gcn_layer1_kernel(a_ref, dr_ref, dc_ref, xw1_ref, b1_ref, wml_ref,
                       hw_ref, acc_ref):
    """hw[i] = (((A_hat @ xw1) + b1) @ Wml)[i], K-tiled accumulation over the A stream."""
    k = pl.program_id(1)
    nk = pl.num_programs(1)

    @pl.when(k == 0)
    def _init():
        acc_ref[...] = jnp.zeros_like(acc_ref)

    # Normalize the raw (A+I) counts tile on the VPU (DMA-bound kernel -> free):
    #   A_hat[i, j] = dinv[i] * (A+I)[i, j] * dinv[j]
    a_hat = (dr_ref[...] * a_ref[...].astype(jnp.float32) * dc_ref[...]
             ).astype(jnp.bfloat16)
    acc_ref[...] += jnp.dot(a_hat, xw1_ref[...], preferred_element_type=jnp.float32)

    @pl.when(k == nk - 1)
    def _finalize():
        h = (acc_ref[...] + b1_ref[...]).astype(jnp.bfloat16)
        # Hoisted second-layer projection: computed once per row tile, stored bf16.
        hw_ref[...] = jnp.dot(h, wml_ref[...],
                              preferred_element_type=jnp.float32).astype(jnp.bfloat16)


def _gcn_layer2_kernel(a_ref, dr_ref, dc_ref, hw_ref, bml_ref, eps_ref,
                       out_ref, acc_ref):
    """[z | mu | logstd][i] from (A_hat @ hw)[i] + bias, K-tiled accumulation."""
    k = pl.program_id(1)
    nk = pl.num_programs(1)

    @pl.when(k == 0)
    def _init():
        acc_ref[...] = jnp.zeros_like(acc_ref)

    a_hat = (dr_ref[...] * a_ref[...].astype(jnp.float32) * dc_ref[...]
             ).astype(jnp.bfloat16)
    acc_ref[...] += jnp.dot(a_hat, hw_ref[...], preferred_element_type=jnp.float32)

    @pl.when(k == nk - 1)
    def _finalize():
        out_c = acc_ref.shape[1] // 2                 # hid == 2 * out_ch
        ml = acc_ref[...] + bml_ref[...]
        mu = ml[:, :out_c]
        logstd = ml[:, out_c:]
        z = mu + eps_ref[...] * jnp.exp(logstd)       # f32 elementwise tail (EUP exp)
        # Packed store [z | mu | logstd]; 3*out_ch lanes (<128) is a masked store but
        # it happens once per row tile -> negligible (low-priority review item 9).
        out_ref[...] = jnp.concatenate([z, mu, logstd], axis=1)


def _round_up(x, m):
    return ((x + m - 1) // m) * m


def _vmem_limit(io_block_bytes, scratch_bytes):
    # I/O blocks are double-buffered by the pipeline; add headroom for Mosaic's
    # internal scratch; clamp to [default scoped limit, v7x physical VMEM].
    est = 2 * io_block_bytes + scratch_bytes
    est = int(1.5 * est) + (4 << 20)
    return int(min(max(est, 32 << 20), 64 << 20))


@functools.partial(jax.jit, static_argnames=("block_rows", "block_k"))
def graph_encoder_forward(x, edge_index, params, eps, *, block_rows=256, block_k=1024):
    n, _ = x.shape
    hid = params["w1"].shape[1]                     # 2 * out_channels
    out_ch = params["wmu"].shape[1]
    assert hid == 2 * out_ch

    # ---- static tiling (shrink tiles for small graphs) ----
    n128 = _round_up(n, 128)
    blk_i = min(block_rows, n128)
    blk_k = min(block_k, n128)
    n_pad = _round_up(n, math.lcm(blk_i, blk_k))
    nt_i = n_pad // blk_i
    nt_k = n_pad // blk_k

    # ---- glue: single N^2 pass builds raw (A+I) counts directly at padded size ----
    src, dst = edge_index[0], edge_index[1]
    loop = jnp.arange(n, dtype=edge_index.dtype)
    src_all = jnp.concatenate([src, loop])
    dst_all = jnp.concatenate([dst, loop])
    ones = jnp.ones(src_all.shape, jnp.bfloat16)
    # Messages flow src -> dst: adj[dst, src] += 1. Duplicate edges accumulate
    # (matches torch_geometric on a non-coalesced edge_index); exact in bf16 for
    # per-entry multiplicity < 256.
    adj = jnp.zeros((n_pad, n_pad), jnp.bfloat16).at[dst_all, src_all].add(ones)
    # Degrees straight from the edge list (O(E), exact f32) == row sums of (A+I).
    deg = jnp.zeros((n_pad,), jnp.float32).at[dst_all].add(1.0)
    dinv = jnp.where(deg > 0.0, jax.lax.rsqrt(jnp.maximum(deg, 1.0)), 0.0)
    dinv_row = dinv[:, None]                        # (n_pad, 1)  f32
    dinv_col = dinv[None, :]                        # (1, n_pad)  f32

    # ---- hoisted tiny GEMM: xw1 = x @ W1, fed to the MXU in bf16 ----
    x_pad = jnp.pad(x, ((0, n_pad - n), (0, 0)))
    xw1 = (x_pad @ params["w1"]).astype(jnp.bfloat16)                     # (n_pad, hid)

    wml = jnp.concatenate([params["wmu"], params["wls"]], axis=1).astype(jnp.bfloat16)
    bml = jnp.concatenate([params["bmu"], params["bls"]], axis=1)         # (1, 2*out) f32
    eps_p = jnp.pad(eps, ((0, n_pad - n), (0, 0)))

    grid = (nt_i, nt_k)          # row tiles ("parallel") x K reduction ("arbitrary", last)
    a_spec = pl.BlockSpec((blk_i, blk_k), lambda i, k: (i, k))
    dr_spec = pl.BlockSpec((blk_i, 1), lambda i, k: (i, 0))
    dc_spec = pl.BlockSpec((1, blk_k), lambda i, k: (0, k))

    # ---------------- pass 1: hw = ((A_hat @ xw1) + b1) @ Wml  -> bf16 [n_pad, hid] ----
    io1 = (blk_i * blk_k * 2 + blk_i * 4 + blk_k * 4 + blk_k * hid * 2
           + hid * 4 + hid * (2 * out_ch) * 2 + blk_i * hid * 2)
    scr1 = blk_i * hid * 4 + blk_i * blk_k * 6      # acc + in-kernel normalization temps
    hw = pl.pallas_call(
        _gcn_layer1_kernel,
        out_shape=jax.ShapeDtypeStruct((n_pad, hid), jnp.bfloat16),
        grid_spec=pltpu.PrefetchScalarGridSpec(
            num_scalar_prefetch=0,
            grid=grid,
            in_specs=[
                a_spec, dr_spec, dc_spec,
                pl.BlockSpec((blk_k, hid), lambda i, k: (k, 0)),        # xw1 K-slab
                pl.BlockSpec((1, hid), lambda i, k: (0, 0)),            # b1 (resident)
                pl.BlockSpec((hid, 2 * out_ch), lambda i, k: (0, 0)),   # Wml (resident)
            ],
            out_specs=pl.BlockSpec((blk_i, hid), lambda i, k: (i, 0)),
            scratch_shapes=[pltpu.VMEM((blk_i, hid), jnp.float32)],
        ),
        compiler_params=pltpu.CompilerParams(
            dimension_semantics=("parallel", "arbitrary"),
            vmem_limit_bytes=_vmem_limit(io1, scr1),
        ),
    )(adj, dinv_row, dinv_col, xw1, params["b1"], wml)

    # ---------------- pass 2: [z|mu|logstd] = finalize(A_hat @ hw + bml, eps) ----------
    io2 = (blk_i * blk_k * 2 + blk_i * 4 + blk_k * 4 + blk_k * hid * 2
           + (2 * out_ch) * 4 + blk_i * out_ch * 4 + blk_i * 3 * out_ch * 4)
    scr2 = blk_i * (2 * out_ch) * 4 + blk_i * blk_k * 6
    packed = pl.pallas_call(
        _gcn_layer2_kernel,
        out_shape=jax.ShapeDtypeStruct((n_pad, 3 * out_ch), jnp.float32),
        grid_spec=pltpu.PrefetchScalarGridSpec(
            num_scalar_prefetch=0,
            grid=grid,
            in_specs=[
                a_spec, dr_spec, dc_spec,
                pl.BlockSpec((blk_k, hid), lambda i, k: (k, 0)),        # hw K-slab
                pl.BlockSpec((1, 2 * out_ch), lambda i, k: (0, 0)),     # bml (resident)
                pl.BlockSpec((blk_i, out_ch), lambda i, k: (i, 0)),     # eps rows
            ],
            out_specs=pl.BlockSpec((blk_i, 3 * out_ch), lambda i, k: (i, 0)),
            scratch_shapes=[pltpu.VMEM((blk_i, 2 * out_ch), jnp.float32)],
        ),
        compiler_params=pltpu.CompilerParams(
            dimension_semantics=("parallel", "arbitrary"),
            vmem_limit_bytes=_vmem_limit(io2, scr2),
        ),
    )(adj, dinv_row, dinv_col, hw, bml, eps_p)

    z = packed[:n, :out_ch]
    mu = packed[:n, out_ch:2 * out_ch]
    logstd = packed[:n, 2 * out_ch:]
    return z, mu, logstd


def init_params(key, in_channels, out_channels):
    """Deterministic glorot-like init matching GCNConv weight/bias shapes."""
    hid = 2 * out_channels
    k1, k2, k3 = jax.random.split(key, 3)

    def glorot(k, fan_in, fan_out):
        lim = (6.0 / (fan_in + fan_out)) ** 0.5
        return jax.random.uniform(k, (fan_in, fan_out), jnp.float32, -lim, lim)

    return {
        "w1":  glorot(k1, in_channels, hid),
        "b1":  jnp.zeros((1, hid), jnp.float32),
        "wmu": glorot(k2, hid, out_channels),
        "bmu": jnp.zeros((1, out_channels), jnp.float32),
        "wls": glorot(k3, hid, out_channels),
        "bls": jnp.zeros((1, out_channels), jnp.float32),
    }


if __name__ == "__main__":
    key = jax.random.PRNGKey(0)
    kx, kp, keps = jax.random.split(key, 3)

    num_nodes = 300          # pads to 512 rows with the test tiling -> grid (4, 2)
    in_channels = 16
    out_channels = 8

    x = jax.random.normal(kx, (num_nodes, in_channels), jnp.float32)

    # bidirectional ring + chord graph, edge_index shape [2, E] (no duplicate edges)
    idx = jnp.arange(num_nodes, dtype=jnp.int32)
    nbr1 = (idx + 1) % num_nodes
    nbr5 = (idx + 5) % num_nodes
    src = jnp.concatenate([idx, nbr1, idx, nbr5])
    dst = jnp.concatenate([nbr1, idx, nbr5, idx])
    edge_index = jnp.stack([src, dst], axis=0)

    params = init_params(kp, in_channels, out_channels)

    # eps for reparametrization (torch.randn_like equivalent, host-side PRNG)
    eps = jax.random.normal(keps, (num_nodes, out_channels), jnp.float32)

    z, mu, logstd = graph_encoder_forward(x, edge_index, params, eps,
                                          block_rows=128, block_k=256)
    jax.block_until_ready((z, mu, logstd))

    # ---- pure-JAX reference mirroring the kernel's bf16 quantization points ----
    src_all = jnp.concatenate([src, idx])
    dst_all = jnp.concatenate([dst, idx])
    adjI = jnp.zeros((num_nodes, num_nodes), jnp.float32).at[dst_all, src_all].add(1.0)
    deg = adjI.sum(axis=1)
    dinv = jnp.where(deg > 0, jax.lax.rsqrt(jnp.maximum(deg, 1.0)), 0.0)
    a_hat = (dinv[:, None] * adjI * dinv[None, :]).astype(jnp.bfloat16).astype(jnp.float32)
    wml = jnp.concatenate([params["wmu"], params["wls"]], axis=1)
    bml = jnp.concatenate([params["bmu"], params["bls"]], axis=1)
    wml_bf = wml.astype(jnp.bfloat16).astype(jnp.float32)
    xw1_bf = (x @ params["w1"]).astype(jnp.bfloat16).astype(jnp.float32)
    h_ref = a_hat @ xw1_bf + params["b1"]
    hw_ref = (h_ref.astype(jnp.bfloat16).astype(jnp.float32) @ wml_bf
              ).astype(jnp.bfloat16).astype(jnp.float32)
    ml = a_hat @ hw_ref + bml
    mu_ref = ml[:, :out_channels]
    ls_ref = ml[:, out_channels:]
    z_ref = mu_ref + eps * jnp.exp(ls_ref)

    assert jnp.allclose(mu, mu_ref, atol=2e-2, rtol=2e-2), "mu mismatch"
    assert jnp.allclose(logstd, ls_ref, atol=2e-2, rtol=2e-2), "logstd mismatch"
    assert jnp.allclose(z, z_ref, atol=2e-2, rtol=2e-2), "z mismatch"

    print("KERNEL_OK")
</pallas_src>

<mosaic_0001>
module attributes {stable_mosaic.version = 11 : i64} {
  func.func @_gcn_layer1_kernel(%arg0: i32, %arg1: i32, %arg2: memref<128x256xbf16, #tpu.memory_space<vmem>>, %arg3: memref<128x1xf32, #tpu.memory_space<vmem>>, %arg4: memref<1x256xf32, #tpu.memory_space<vmem>>, %arg5: memref<256x16xbf16, #tpu.memory_space<vmem>>, %arg6: memref<1x16xf32, #tpu.memory_space<vmem>>, %arg7: memref<16x16xbf16, #tpu.memory_space<vmem>>, %arg8: memref<128x16xbf16, #tpu.memory_space<vmem>>, %arg9: memref<128x16xf32, #tpu.memory_space<vmem>>) attributes {dimension_semantics = [#tpu.dimension_semantics<parallel>, #tpu.dimension_semantics<arbitrary>], iteration_bounds = array<i64: 4, 2>, scalar_prefetch = 0 : i64, scratch_operands = 1 : i64, tpu.core_type = #tpu.core_type<tc>, window_params = [{transform_indices = @transform_0, window_bounds = array<i64: 128, 256>}, {transform_indices = @transform_1, window_bounds = array<i64: 128, 1>}, {transform_indices = @transform_2, window_bounds = array<i64: 1, 256>}, {transform_indices = @transform_3, window_bounds = array<i64: 256, 16>}, {pipeline_mode = #tpu.pipeline_mode<synchronous>, transform_indices = @transform_4, window_bounds = array<i64: 1, 16>}, {pipeline_mode = #tpu.pipeline_mode<synchronous>, transform_indices = @transform_5, window_bounds = array<i64: 16, 16>}, {transform_indices = @transform_6, window_bounds = array<i64: 128, 16>}]} {
    %c0_i32 = arith.constant 0 : i32
    %0 = arith.cmpi eq, %arg1, %c0_i32 : i32
    %1 = arith.extui %0 : i1 to i32
    %c0_i32_0 = arith.constant 0 : i32
    %2 = arith.cmpi ne, %1, %c0_i32_0 : i32
    scf.if %2 {
      %cst_13 = arith.constant 0.000000e+00 : f32
      %20 = vector.broadcast %cst_13 : f32 to vector<128x16xf32>
      %c0_14 = arith.constant 0 : index
      %c0_15 = arith.constant 0 : index
      %21 = vector.load %arg9[%c0_14, %c0_15] : memref<128x16xf32, #tpu.memory_space<vmem>>, vector<128x16xf32>
      tpu.vector_store %arg9[%c0_14, %c0_15], %20 {strides = array<i32>} : memref<128x16xf32, #tpu.memory_space<vmem>>, vector<128x16xf32>,
    } else {
    }
    %c0 = arith.constant 0 : index
    %c0_1 = arith.constant 0 : index
    %3 = vector.load %arg3[%c0, %c0_1] : memref<128x1xf32, #tpu.memory_space<vmem>>, vector<128x1xf32>
    %c0_2 = arith.constant 0 : index
    %c0_3 = arith.constant 0 : index
    %4 = vector.load %arg2[%c0_2, %c0_3] : memref<128x256xbf16, #tpu.memory_space<vmem>>, vector<128x256xbf16>
    %5 = arith.extf %4 : vector<128x256xbf16> to vector<128x256xf32>
    %6 = vector.broadcast %3 : vector<128x1xf32> to vector<128x256xf32>
    %7 = arith.mulf %6, %5 : vector<128x256xf32>
    %c0_4 = arith.constant 0 : index
    %c0_5 = arith.constant 0 : index
    %8 = vector.load %arg4[%c0_4, %c0_5] : memref<1x256xf32, #tpu.memory_space<vmem>>, vector<1x256xf32>
    %9 = vector.broadcast %8 : vector<1x256xf32> to vector<128x256xf32>
    %10 = arith.mulf %7, %9 : vector<128x256xf32>
    %11 = arith.truncf %10 : vector<128x256xf32> to vector<128x256xbf16>
    %c0_6 = arith.constant 0 : index
    %c0_7 = arith.constant 0 : index
    %12 = vector.load %arg9[%c0_6, %c0_7] : memref<128x16xf32, #tpu.memory_space<vmem>>, vector<128x16xf32>
    %c0_8 = arith.constant 0 : index
    %c0_9 = arith.constant 0 : index
    %13 = vector.load %arg5[%c0_8, %c0_9] : memref<256x16xbf16, #tpu.memory_space<vmem>>, vector<256x16xbf16>
    %cst = arith.constant dense<0.000000e+00> : vector<128x16xf32>
    %14 = tpu.matmul %11, %13, %cst {dimension_numbers = #tpu.dot_dimension_numbers<[1], [0], [0], [1], [0, 0, 1, 1], [], []>} : vector<128x256xbf16>, vector<256x16xbf16>, vector<128x16xf32> -> vector<128x16xf32>
    %15 = arith.addf %12, %14 : vector<128x16xf32>
    %c0_10 = arith.constant 0 : index
    %c0_11 = arith.constant 0 : index
    %16 = vector.load %arg9[%c0_10, %c0_11] : memref<128x16xf32, #tpu.memory_space<vmem>>, vector<128x16xf32>
    tpu.vector_store %arg9[%c0_10, %c0_11], %15 {strides = array<i32>} : memref<128x16xf32, #tpu.memory_space<vmem>>, vector<128x16xf32>,
    %c1_i32 = arith.constant 1 : i32
    %17 = arith.cmpi eq, %arg1, %c1_i32 : i32
    %18 = arith.extui %17 : i1 to i32
    %c0_i32_12 = arith.constant 0 : i32
    %19 = arith.cmpi ne, %18, %c0_i32_12 : i32
    scf.if %19 {
      %c0_13 = arith.constant 0 : index
      %c0_14 = arith.constant 0 : index
      %20 = vector.load %arg9[%c0_13, %c0_14] : memref<128x16xf32, #tpu.memory_space<vmem>>, vector<128x16xf32>
      %c0_15 = arith.constant 0 : index
      %c0_16 = arith.constant 0 : index
      %21 = vector.load %arg6[%c0_15, %c0_16] : memref<1x16xf32, #tpu.memory_space<vmem>>, vector<1x16xf32>
      %22 = vector.broadcast %21 : vector<1x16xf32> to vector<128x16xf32>
      %23 = arith.addf %20, %22 : vector<128x16xf32>
      %24 = arith.truncf %23 : vector<128x16xf32> to vector<128x16xbf16>
      %c0_17 = arith.constant 0 : index
      %c0_18 = arith.constant 0 : index
      %25 = vector.load %arg7[%c0_17, %c0_18] : memref<16x16xbf16, #tpu.memory_space<vmem>>, vector<16x16xbf16>
      %cst_19 = arith.constant dense<0.000000e+00> : vector<128x16xf32>
      %26 = tpu.matmul %24, %25, %cst_19 {dimension_numbers = #tpu.dot_dimension_numbers<[1], [0], [0], [1], [0, 0, 1, 1], [], []>} : vector<128x16xbf16>, vector<16x16xbf16>, vector<128x16xf32> -> vector<128x16xf32>
      %27 = arith.truncf %26 : vector<128x16xf32> to vector<128x16xbf16>
      %c0_20 = arith.constant 0 : index
      %c0_21 = arith.constant 0 : index
      %28 = vector.load %arg8[%c0_20, %c0_21] : memref<128x16xbf16, #tpu.memory_space<vmem>>, vector<128x16xbf16>
      tpu.vector_store %arg8[%c0_20, %c0_21], %27 {strides = array<i32>} : memref<128x16xbf16, #tpu.memory_space<vmem>>, vector<128x16xbf16>,
    } else {
    }
    return
  }
  func.func @transform_0(%arg0: i32, %arg1: i32) -> (i32, i32) {
    %c0_i32 = arith.constant 0 : i32
    return %arg0, %arg1 : i32, i32
  }
  func.func @transform_1(%arg0: i32, %arg1: i32) -> (i32, i32) {
    %c0_i32 = arith.constant 0 : i32
    %c0_i32_0 = arith.constant 0 : i32
    return %arg0, %c0_i32 : i32, i32
  }
  func.func @transform_2(%arg0: i32, %arg1: i32) -> (i32, i32) {
    %c0_i32 = arith.constant 0 : i32
    %c0_i32_0 = arith.constant 0 : i32
    return %c0_i32, %arg1 : i32, i32
  }
  func.func @transform_3(%arg0: i32, %arg1: i32) -> (i32, i32) {
    %c0_i32 = arith.constant 0 : i32
    %c0_i32_0 = arith.constant 0 : i32
    return %arg1, %c0_i32 : i32, i32
  }
  func.func @transform_4(%arg0: i32, %arg1: i32) -> (i32, i32) {
    %c0_i32 = arith.constant 0 : i32
    %c0_i32_0 = arith.constant 0 : i32
    %c0_i32_1 = arith.constant 0 : i32
    return %c0_i32, %c0_i32_0 : i32, i32
  }
  func.func @transform_5(%arg0: i32, %arg1: i32) -> (i32, i32) {
    %c0_i32 = arith.constant 0 : i32
    %c0_i32_0 = arith.constant 0 : i32
    %c0_i32_1 = arith.constant 0 : i32
    return %c0_i32, %c0_i32_0 : i32, i32
  }
  func.func @transform_6(%arg0: i32, %arg1: i32) -> (i32, i32) {
    %c0_i32 = arith.constant 0 : i32
    %c0_i32_0 = arith.constant 0 : i32
    return %arg0, %c0_i32 : i32, i32
  }
}

module attributes {stable_mosaic.version = 11 : i64} {
  func.func @_gcn_layer2_kernel(%arg0: i32, %arg1: i32, %arg2: memref<128x256xbf16, #tpu.memory_space<vmem>>, %arg3: memref<128x1xf32, #tpu.memory_space<vmem>>, %arg4: memref<1x256xf32, #tpu.memory_space<vmem>>, %arg5: memref<256x16xbf16, #tpu.memory_space<vmem>>, %arg6: memref<1x16xf32, #tpu.memory_space<vmem>>, %arg7: memref<128x8xf32, #tpu.memory_space<vmem>>, %arg8: memref<128x24xf32, #tpu.memory_space<vmem>>, %arg9: memref<128x16xf32, #tpu.memory_space<vmem>>) attributes {dimension_semantics = [#tpu.dimension_semantics<parallel>, #tpu.dimension_semantics<arbitrary>], iteration_bounds = array<i64: 4, 2>, scalar_prefetch = 0 : i64, scratch_operands = 1 : i64, tpu.core_type = #tpu.core_type<tc>, window_params = [{transform_indices = @transform_0, window_bounds = array<i64: 128, 256>}, {transform_indices = @transform_1, window_bounds = array<i64: 128, 1>}, {transform_indices = @transform_2, window_bounds = array<i64: 1, 256>}, {transform_indices = @transform_3, window_bounds = array<i64: 256, 16>}, {pipeline_mode = #tpu.pipeline_mode<synchronous>, transform_indices = @transform_4, window_bounds = array<i64: 1, 16>}, {transform_indices = @transform_5, window_bounds = array<i64: 128, 8>}, {transform_indices = @transform_6, window_bounds = array<i64: 128, 24>}]} {
    %c0_i32 = arith.constant 0 : i32
    %0 = arith.cmpi eq, %arg1, %c0_i32 : i32
    %1 = arith.extui %0 : i1 to i32
    %c0_i32_0 = arith.constant 0 : i32
    %2 = arith.cmpi ne, %1, %c0_i32_0 : i32
    scf.if %2 {
      %cst_13 = arith.constant 0.000000e+00 : f32
      %20 = vector.broadcast %cst_13 : f32 to vector<128x16xf32>
      %c0_14 = arith.constant 0 : index
      %c0_15 = arith.constant 0 : index
      %21 = vector.load %arg9[%c0_14, %c0_15] : memref<128x16xf32, #tpu.memory_space<vmem>>, vector<128x16xf32>
      tpu.vector_store %arg9[%c0_14, %c0_15], %20 {strides = array<i32>} : memref<128x16xf32, #tpu.memory_space<vmem>>, vector<128x16xf32>,
    } else {
    }
    %c0 = arith.constant 0 : index
    %c0_1 = arith.constant 0 : index
    %3 = vector.load %arg3[%c0, %c0_1] : memref<128x1xf32, #tpu.memory_space<vmem>>, vector<128x1xf32>
    %c0_2 = arith.constant 0 : index
    %c0_3 = arith.constant 0 : index
    %4 = vector.load %arg2[%c0_2, %c0_3] : memref<128x256xbf16, #tpu.memory_space<vmem>>, vector<128x256xbf16>
    %5 = arith.extf %4 : vector<128x256xbf16> to vector<128x256xf32>
    %6 = vector.broadcast %3 : vector<128x1xf32> to vector<128x256xf32>
    %7 = arith.mulf %6, %5 : vector<128x256xf32>
    %c0_4 = arith.constant 0 : index
    %c0_5 = arith.constant 0 : index
    %8 = vector.load %arg4[%c0_4, %c0_5] : memref<1x256xf32, #tpu.memory_space<vmem>>, vector<1x256xf32>
    %9 = vector.broadcast %8 : vector<1x256xf32> to vector<128x256xf32>
    %10 = arith.mulf %7, %9 : vector<128x256xf32>
    %11 = arith.truncf %10 : vector<128x256xf32> to vector<128x256xbf16>
    %c0_6 = arith.constant 0 : index
    %c0_7 = arith.constant 0 : index
    %12 = vector.load %arg9[%c0_6, %c0_7] : memref<128x16xf32, #tpu.memory_space<vmem>>, vector<128x16xf32>
    %c0_8 = arith.constant 0 : index
    %c0_9 = arith.constant 0 : index
    %13 = vector.load %arg5[%c0_8, %c0_9] : memref<256x16xbf16, #tpu.memory_space<vmem>>, vector<256x16xbf16>
    %cst = arith.constant dense<0.000000e+00> : vector<128x16xf32>
    %14 = tpu.matmul %11, %13, %cst {dimension_numbers = #tpu.dot_dimension_numbers<[1], [0], [0], [1], [0, 0, 1, 1], [], []>} : vector<128x256xbf16>, vector<256x16xbf16>, vector<128x16xf32> -> vector<128x16xf32>
    %15 = arith.addf %12, %14 : vector<128x16xf32>
    %c0_10 = arith.constant 0 : index
    %c0_11 = arith.constant 0 : index
    %16 = vector.load %arg9[%c0_10, %c0_11] : memref<128x16xf32, #tpu.memory_space<vmem>>, vector<128x16xf32>
    tpu.vector_store %arg9[%c0_10, %c0_11], %15 {strides = array<i32>} : memref<128x16xf32, #tpu.memory_space<vmem>>, vector<128x16xf32>,
    %c1_i32 = arith.constant 1 : i32
    %17 = arith.cmpi eq, %arg1, %c1_i32 : i32
    %18 = arith.extui %17 : i1 to i32
    %c0_i32_12 = arith.constant 0 : i32
    %19 = arith.cmpi ne, %18, %c0_i32_12 : i32
    scf.if %19 {
      %c0_13 = arith.constant 0 : index
      %c0_14 = arith.constant 0 : index
      %20 = vector.load %arg9[%c0_13, %c0_14] : memref<128x16xf32, #tpu.memory_space<vmem>>, vector<128x16xf32>
      %c0_15 = arith.constant 0 : index
      %c0_16 = arith.constant 0 : index
      %21 = vector.load %arg6[%c0_15, %c0_16] : memref<1x16xf32, #tpu.memory_space<vmem>>, vector<1x16xf32>
      %22 = vector.broadcast %21 : vector<1x16xf32> to vector<128x16xf32>
      %23 = arith.addf %20, %22 : vector<128x16xf32>
      %24 = vector.extract_strided_slice %23 {offsets = [0, 0], sizes = [128, 8], strides = [1, 1]} : vector<128x16xf32> to vector<128x8xf32>
      %25 = vector.extract_strided_slice %23 {offsets = [0, 8], sizes = [128, 8], strides = [1, 1]} : vector<128x16xf32> to vector<128x8xf32>
      %c0_17 = arith.constant 0 : index
      %c0_18 = arith.constant 0 : index
      %26 = vector.load %arg7[%c0_17, %c0_18] : memref<128x8xf32, #tpu.memory_space<vmem>>, vector<128x8xf32>
      %27 = math.exp %25 : vector<128x8xf32>
      %28 = arith.mulf %26, %27 : vector<128x8xf32>
      %29 = arith.addf %24, %28 : vector<128x8xf32>
      %30 = tpu.concatenate %29, %24, %25 in 1 : vector<128x8xf32>, vector<128x8xf32>, vector<128x8xf32> -> vector<128x24xf32>
      %c0_19 = arith.constant 0 : index
      %c0_20 = arith.constant 0 : index
      %31 = vector.load %arg8[%c0_19, %c0_20] : memref<128x24xf32, #tpu.memory_space<vmem>>, vector<128x24xf32>
      tpu.vector_store %arg8[%c0_19, %c0_20], %30 {strides = array<i32>} : memref<128x24xf32, #tpu.memory_space<vmem>>, vector<128x24xf32>,
    } else {
    }
    return
  }
  func.func @transform_0(%arg0: i32, %arg1: i32) -> (i32, i32) {
    %c0_i32 = arith.constant 0 : i32
    return %arg0, %arg1 : i32, i32
  }
  func.func @transform_1(%arg0: i32, %arg1: i32) -> (i32, i32) {
    %c0_i32 = arith.constant 0 : i32
    %c0_i32_0 = arith.constant 0 : i32
    return %arg0, %c0_i32 : i32, i32
  }
  func.func @transform_2(%arg0: i32, %arg1: i32) -> (i32, i32) {
    %c0_i32 = arith.constant 0 : i32
    %c0_i32_0 = arith.constant 0 : i32
    return %c0_i32, %arg1 : i32, i32
  }
  func.func @transform_3(%arg0: i32, %arg1: i32) -> (i32, i32) {
    %c0_i32 = arith.constant 0 : i32
    %c0_i32_0 = arith.constant 0 : i32
    return %arg1, %c0_i32 : i32, i32
  }
  func.func @transform_4(%arg0: i32, %arg1: i32) -> (i32, i32) {
    %c0_i32 = arith.constant 0 : i32
    %c0_i32_0 = arith.constant 0 : i32
    %c0_i32_1 = arith.constant 0 : i32
    return %c0_i32, %c0_i32_0 : i32, i32
  }
  func.func @transform_5(%arg0: i32, %arg1: i32) -> (i32, i32) {
    %c0_i32 = arith.constant 0 : i32
    %c0_i32_0 = arith.constant 0 : i32
    return %arg0, %c0_i32 : i32, i32
  }
  func.func @transform_6(%arg0: i32, %arg1: i32) -> (i32, i32) {
    %c0_i32 = arith.constant 0 : i32
    %c0_i32_0 = arith.constant 0 : i32
    return %arg0, %c0_i32 : i32, i32
  }
}

</mosaic_0001>

<bundles_post_ra>
// kernel: graph_encoder_forward.3
= control target key start
LH: loop header
LB: loop body
LE: loop exit
PB: predicated region body
PF: predicated region fallthrough
CT: control target
= control target key end

     0   :  { %s2205_s0 = inlined_call_operand.vmem [shape: bf16[512,512], index: 0, kind: input, shape index: {}]   ;;  %s2206_s1 = inlined_call_operand.vmem [shape: f32[512,1], index: 1, kind: input, shape index: {}]   ;;  %s2207_s2 = inlined_call_operand.vmem [shape: f32[1,512], index: 2, kind: input, shape index: {}]   ;;  %s2208_s3 = inlined_call_operand.vmem [shape: bf16[512,16], index: 3, kind: input, shape index: {}]   ;;  %s2209_s4 = inlined_call_operand.vmem [shape: f32[1,16], index: 4, kind: input, shape index: {}]   ;;  %s2210_s5 = inlined_call_operand.vmem [shape: f32[512,8], index: 5, kind: input, shape index: {}]   ;;  %s2211_s6 = inlined_call_operand.vmem [shape: f32[512,24], index: 6, kind: output, shape index: {}]  }
   0x1   :  { %2212 = sst [smem:[#allocation4_spill]] %s2205_s0 }
   0x2   :  { %s1734_s21 = smov 0   ;;  %s1736_s22 = smov 0  }
   0x3   :  { %s1738_s23 = smov 0   ;;  %s1740_s24 = smov 0  }
   0x4   :  { %s1742_s25 = smov 0   ;;  %s1744_s26 = smov 0  }
   0x5   :  { %s1746_s27 = smov 0  }
   0x6 LB: > { %s25_s28 = sadd.s32 1, %s1685_s25  ;;  %s28_s29 = sadd.s32 1, %s1689_s26  ;;  %s1693_s27 = sphi %s1746_s27, %s16_s27   ;;  %s1689_s26 = sphi %s1744_s26, %s2219_s26   ;;  %s1685_s25 = sphi %s1742_s25, %s2218_s25   ;;  %s1681_s24 = sphi %s1740_s24, %s2217_s24   ;;  %s1677_s23 = sphi %s1738_s23, %s2216_s23   ;;  %s1673_s22 = sphi %s1736_s22, %s2215_s22   ;;  %s1669_s21 = sphi %s1734_s21, %s2214_s21  }
   0x7   : > { %p26_p0 = scmp.ge.s32.totalorder %s25_s28, 2  ;;  %p44_p1 = scmp.ne.s32.totalorder %s1673_s22, %s1669_s21 }
   0x8   : > { %p45_p2 = scmp.eq.s32.totalorder %s1693_s27, 0  ;;  %s37_s9 = sadd.s32 1, %s1673_s22 }
   0x9   : > { %s2221_s28 = smov (%p26_p0, %s25_s28), 0  ;;  %s2223_s29 = smov (!%p26_p0, %s28_s29), %s1689_s26 }
   0xa   : > { %p46_p3 = por %p45_p2, %p44_p1  ;;  %p30_p4 = scmp.ge.s32.totalorder %s2223_s29, 4 }
   0xb   : > { %s33_s30 = ssub.s32 %s1685_s25, %s2221_s28  ;;  %p1410_p6 = scmp.ge.s32.totalorder %s1693_s27, 8 }
   0xc   : > { %s2225_s29 = smov (%p30_p4, %s2223_s29), 0 }
   0xd   : > { %s32_s7 = ssub.s32 %s1689_s26, %s2225_s29  ;;  %224 = sbr.rel (%p1410_p6) target bundleno = 38 (0x26), region = 20 }
   0xe   : > { %s34_s8 = sor.u32 %s33_s30, %s32_s7 }
   0xf   : > { %p35_p5 = scmp.eq.s32.totalorder %s34_s8, 0 }
  0x11   : > { %s1785_s10 = scalar_select %p35_p5, %s1673_s22, %s37_s9  }
  0x14   : > { %227 = sbr.rel (!%p46_p3) target bundleno = 38 (0x26), region = 24  ;;  %s229_s11 = sand.u32 (%p46_p3), 1, %s1673_s22  }
  0x15   : > { %s1413_s12 = sshll.u32 (%p46_p3), %s1685_s25, 1  ;;  %s1411_s13 = sshll.u32 (%p46_p3), %s229_s11, 7 }
  0x16   : > { %s1448_s14 = sshll.u32 (%p46_p3), %s1689_s26, 6  ;;  %s2213_s0 = sld [smem:[#allocation4_spill]] (%p46_p3) }
  0x17   : > { %s235_s15 = sadd.s32 (%p46_p3), %s1448_s14, %s1413_s12  ;;  %s231_s20 = scalar_lea.vmem (%p46_p3), [#allocation3], %s1411_s13 }
  0x18   : > { %s1415_s16 = sshll.u32 (%p46_p3), %s235_s15, 2 }
  0x1c   : > { %s1794_s19 = scalar_lea.vmem %s2213_s0, %s1415_s16 }
  0x1d   : > { %v295_v0 = vld [vmem:[%s1794_s19] sm:$0xff]  ;;  %v297_v1 = vld [vmem:[%s1794_s19 + $0x10] sm:$0xff] }
  0x1e   : > { %v299_v2 = vld [vmem:[%s1794_s19 + $0x20] sm:$0xff]  ;;  %296 = vst [vmem:[%s231_s20] sm:$0xff] %v295_v0  ;;  %298 = vst [vmem:[%s231_s20 + $0x8] sm:$0xff] %v297_v1  ;;  %v301_v3 = vld [vmem:[%s1794_s19 + $0x30] sm:$0xff] }
  0x1f   : > { %300 = vst [vmem:[%s231_s20 + $0x10] sm:$0xff] %v299_v2  ;;  %v303_v4 = vld [vmem:[%s1794_s19 + $0x40] sm:$0xff]  ;;  %v305_v5 = vld [vmem:[%s1794_s19 + $0x50] sm:$0xff]  ;;  %302 = vst [vmem:[%s231_s20 + $0x18] sm:$0xff] %v301_v3 }
  0x20   : > { %304 = vst [vmem:[%s231_s20 + $0x20] sm:$0xff] %v303_v4  ;;  %306 = vst [vmem:[%s231_s20 + $0x28] sm:$0xff] %v305_v5  ;;  %v307_v6 = vld [vmem:[%s1794_s19 + $0x60] sm:$0xff]  ;;  %v309_v7 = vld [vmem:[%s1794_s19 + $0x70] sm:$0xff] }
  0x21   : > { %v311_v8 = vld [vmem:[%s1794_s19 + $0x80] sm:$0xff]  ;;  %308 = vst [vmem:[%s231_s20 + $0x30] sm:$0xff] %v307_v6  ;;  %310 = vst [vmem:[%s231_s20 + $0x38] sm:$0xff] %v309_v7  ;;  %v313_v9 = vld [vmem:[%s1794_s19 + $0x90] sm:$0xff] }
  0x22   : > { %312 = vst [vmem:[%s231_s20 + $0x40] sm:$0xff] %v311_v8  ;;  %v315_v10 = vld [vmem:[%s1794_s19 + $0xa0] sm:$0xff]  ;;  %v317_v11 = vld [vmem:[%s1794_s19 + $0xb0] sm:$0xff]  ;;  %314 = vst [vmem:[%s231_s20 + $0x48] sm:$0xff] %v313_v9 }
  0x23   : > { %316 = vst [vmem:[%s231_s20 + $0x50] sm:$0xff] %v315_v10  ;;  %318 = vst [vmem:[%s231_s20 + $0x58] sm:$0xff] %v317_v11  ;;  %v319_v12 = vld [vmem:[%s1794_s19 + $0xc0] sm:$0xff]  ;;  %v321_v13 = vld [vmem:[%s1794_s19 + $0xd0] sm:$0xff] }
  0x24   : > { %v323_v14 = vld [vmem:[%s1794_s19 + $0xe0] sm:$0xff]  ;;  %320 = vst [vmem:[%s231_s20 + $0x60] sm:$0xff] %v319_v12  ;;  %322 = vst [vmem:[%s231_s20 + $0x68] sm:$0xff] %v321_v13  ;;  %v325_v15 = vld [vmem:[%s1794_s19 + $0xf0] sm:$0xff] }
  0x25   : > { %324 = vst [vmem:[%s231_s20 + $0x70] sm:$0xff] %v323_v14  ;;  %326 = vst [vmem:[%s231_s20 + $0x78] sm:$0xff] %v325_v15 }
  0x26 PF: > { %p1416_p7 = scmp.ge.s32.totalorder %s1693_s27, 1  ;;  %p366_p8 = scmp.lt.s32.totalorder %s1693_s27, 9 }
  0x28   : > { %p367_p9 = pnand %p1416_p7, %p366_p8 }
  0x29   : > { %s373_s30 = sand.u32 (!%p367_p9), 1, %s1669_s21   ;;  %s1418_s7 = sshll.u32 (!%p367_p9), %s1681_s24, 4 }
  0x2a   : > { %370 = sbr.rel (%p367_p9) target bundleno = 634 (0x27a), region = 78  ;;  %s1417_s8 = sshll.u32 (!%p367_p9), %s373_s30, 7 }
  0x2b   : > { %p424_p10 = scmp.lt.s32.totalorder (!%p367_p9), %s1418_s7, 63  ;;  %s1420_s9 = sshll.u32 (!%p367_p9), %s1677_s23, 1 }
  0x2c   : > { %p430_p11 = scmp.lt.s32.totalorder (!%p367_p9), %s1420_s9, 3  ;;  %s1421_s11 = sshll.u32 (!%p367_p9), %s1677_s23, 5 }
  0x2d   : > { %p435_p12 = scmp.lt.s32.totalorder (!%p367_p9), %s1421_s11, 63  ;;  %s1844_s17 = scalar_lea.vmem (!%p367_p9), [#allocation3], %s1417_s8 }
  0x2e   : > { %p1427_p13 = scmp.ne.s32.totalorder (!%p367_p9), %s1677_s23, 0 }
  0x31   : > { %s2227_s7 = smov (!%p424_p10, %s1418_s7), 63  ;;  %s2229_s9 = smov (!%p430_p11, %s1420_s9), 3 }
  0x32   : > { %s1419_s12 = sshll.u32 %s2227_s7, 3  ;;  %s2231_s11 = smov (!%p435_p12, %s1421_s11), 63  ;;  %vm457_vm0 = vcmask (!%p1427_p13), 130048   ;;  %v1695_v16 = vmov (!%p1427_p13), 0.0  }
  0x33   : > { %s1821_s15 = scalar_lea.vmem %s2206_s1, %s1419_s12  ;;  %s1826_s18 = scalar_lea.vmem %s2210_s5, %s1419_s12  ;;  %458 = vst.msk [vmem:[#allocation2] sm:$0xff] (!%p1427_p13), %vm457_vm0, %v1695_v16  ;;  %459 = vst.msk [vmem:[#allocation2 + $0x8] sm:$0xff] (!%p1427_p13), %vm457_vm0, %v1695_v16 }
  0x34   : > { %s432_s19 = scalar_lea.vmem %s2207_s2, %s2229_s9  ;;  %s1837_s7 = scalar_lea.vmem %s2211_s6, %s1419_s12  ;;  %460 = vst.msk [vmem:[#allocation2 + $0x10] sm:$0xff] (!%p1427_p13), %vm457_vm0, %v1695_v16  ;;  %461 = vst.msk [vmem:[#allocation2 + $0x18] sm:$0xff] (!%p1427_p13), %vm457_vm0, %v1695_v16 }
  0x35   : > { %s1422_s13 = sshll.u32 %s2231_s11, 2  ;;  %456 = sbr.rel (%p1427_p13) target bundleno = 60 (0x3c), region = 86  ;;  %462 = vst.msk [vmem:[#allocation2 + $0x20] sm:$0xff] (!%p1427_p13), %vm457_vm0, %v1695_v16  ;;  %463 = vst.msk [vmem:[#allocation2 + $0x28] sm:$0xff] (!%p1427_p13), %vm457_vm0, %v1695_v16 }
  0x36   : > { %s1842_s16 = scalar_lea.vmem %s2208_s3, %s1422_s13  ;;  %464 = vst.msk [vmem:[#allocation2 + $0x30] sm:$0xff] (!%p1427_p13), %vm457_vm0, %v1695_v16  ;;  %465 = vst.msk [vmem:[#allocation2 + $0x38] sm:$0xff] (!%p1427_p13), %vm457_vm0, %v1695_v16 }
  0x37   : > { %466 = vst.msk [vmem:[#allocation2 + $0x40] sm:$0xff] (!%p1427_p13), %vm457_vm0, %v1695_v16  ;;  %467 = vst.msk [vmem:[#allocation2 + $0x48] sm:$0xff] (!%p1427_p13), %vm457_vm0, %v1695_v16 }
  0x38   : > { %468 = vst.msk [vmem:[#allocation2 + $0x50] sm:$0xff] (!%p1427_p13), %vm457_vm0, %v1695_v16  ;;  %469 = vst.msk [vmem:[#allocation2 + $0x58] sm:$0xff] (!%p1427_p13), %vm457_vm0, %v1695_v16 }
  0x39   : > { %470 = vst.msk [vmem:[#allocation2 + $0x60] sm:$0xff] (!%p1427_p13), %vm457_vm0, %v1695_v16  ;;  %471 = vst.msk [vmem:[#allocation2 + $0x68] sm:$0xff] (!%p1427_p13), %vm457_vm0, %v1695_v16 }
  0x3a   : > { %472 = vst.msk [vmem:[#allocation2 + $0x70] sm:$0xff] (!%p1427_p13), %vm457_vm0, %v1695_v16  ;;  %473 = vst.msk [vmem:[#allocation2 + $0x78] sm:$0xff] (!%p1427_p13), %vm457_vm0, %v1695_v16 }
  0x3c PF: > { %v482_v17 = vld [vmem:[%s1821_s15 + $0x40] sm:$0xff]  ;;  %v1696_v19 = vmov 0   ;;  %v483_v20 = vld [vmem:[%s1821_s15 + $0x48] sm:$0xff]  ;;  %v477_v22 = vld [vmem:[%s1821_s15 + $0x18] sm:$0xff]  ;;  %v652_v50 = vlaneseq  ;;  %vm967_vm1 = vcmask 130048   ;;  %p1444_p0 = scmp.ne.s32.totalorder %s1677_s23, 1 }
  0x3d   : > { %v474_v18 = vld [vmem:[%s1821_s15] sm:$0xff]  ;;  %1590 = vset.pattern.permute.xlu1 %v1696_v19  ;;  %1589 = vset.pattern.permute.xlu0 %v1696_v19  ;;  %v475_v21 = vld [vmem:[%s1821_s15 + $0x8] sm:$0xff]  ;;  %v476_v23 = vld [vmem:[%s1821_s15 + $0x10] sm:$0xff]  ;;  %s1697_s23 = smov (!%p1444_p0), 120   ;;  %s1698_s12 = smov (!%p1444_p0), 8   ;;  %vm1235_vm2 = vcmask (!%p1444_p0), 64512  }
  0x3e   : > { %580 = vperm.xlu1 %1590, %v482_v17   ;;  %540 = vperm.xlu0 %1589, %v474_v18   ;;  %v1591_v24 = vld [vmem:[%s1842_s16 + $0x40] sm:$0xff]   ;;  %v1593_v26 = vld [vmem:[%s1842_s16 + $0x48] sm:$0xff]   ;;  %v485_v27 = vld [vmem:[%s1821_s15 + $0x58] sm:$0xff]  ;;  %v653_v51 = vshrl.u32 %v652_v50, 7  ;;  %vm1268_vm3 = vcmask (!%p1444_p0), 195584  }
  0x3f   : > { %v1592_v25 = vld [vmem:[%s1842_s16] sm:$0xff]   ;;  %1449 = vmatprep.subr.bf16.mxu0 %v1591_v24  ;;  %1513 = vmatprep.subr.bf16.mxu1 %v1591_v24  ;;  %v1594_v28 = vld [vmem:[%s1842_s16 + $0x8] sm:$0xff]   ;;  %v484_v29 = vld [vmem:[%s1821_s15 + $0x50] sm:$0xff] }
  0x40   : > { %1450 = vmatpush3.bf16.msra.mxu0 %v1592_v25  ;;  %1521 = vmatpush3.bf16.msra.mxu1 %v1592_v25  ;;  %v1595_v30 = vld [vmem:[%s1842_s16 + $0x50] sm:$0xff]   ;;  %v479_v31 = vld [vmem:[%s1821_s15 + $0x28] sm:$0xff]  ;;  %v478_v33 = vld [vmem:[%s1821_s15 + $0x20] sm:$0xff]  ;;  %v654_v54 = vsub.s32 0, %v653_v51  ;;  %v658_v58 = vsub.s32 1, %v653_v51 }
  0x41   : > { %1451 = vmatprep.subr.bf16.mxu0 %v1593_v26  ;;  %1514 = vmatprep.subr.bf16.mxu1 %v1593_v26  ;;  %v1596_v32 = vld [vmem:[%s1842_s16 + $0x10] sm:$0xff]   ;;  %v1597_v34 = vld [vmem:[%s1842_s16 + $0x58] sm:$0xff]   ;;  %v487_v36 = vld [vmem:[%s1821_s15 + $0x68] sm:$0xff] }
  0x42   : > { %585 = vperm.xlu1 %1590, %v483_v20   ;;  %545 = vperm.xlu0 %1589, %v475_v21   ;;  %v1598_v35 = vld [vmem:[%s1842_s16 + $0x18] sm:$0xff]   ;;  %v486_v37 = vld [vmem:[%s1821_s15 + $0x60] sm:$0xff]  ;;  %v480_v41 = vld [vmem:[%s1821_s15 + $0x30] sm:$0xff] }
  0x43   : > { %v1599_v38 = vld [vmem:[%s1842_s16 + $0x60] sm:$0xff]   ;;  %v481_v40 = vld [vmem:[%s1821_s15 + $0x38] sm:$0xff]  ;;  %v1601_v42 = vld [vmem:[%s1842_s16 + $0x68] sm:$0xff]  }
  0x44   : > { %1452 = vmatpush3.bf16.msra.mxu0 %v1594_v28  ;;  %1522 = vmatpush3.bf16.msra.mxu1 %v1594_v28  ;;  %v1600_v39 = vld [vmem:[%s1842_s16 + $0x20] sm:$0xff]   ;;  %v1602_v43 = vld [vmem:[%s1842_s16 + $0x28] sm:$0xff]   ;;  %v489_v44 = vld [vmem:[%s1821_s15 + $0x78] sm:$0xff] }
  0x45   : > { %1453 = vmatprep.subr.bf16.mxu0 %v1595_v30  ;;  %1515 = vmatprep.subr.bf16.mxu1 %v1595_v30  ;;  %v488_v45 = vld [vmem:[%s1821_s15 + $0x70] sm:$0xff]  ;;  %v1605_v48 = vld [vmem:[%s1842_s16 + $0x78] sm:$0xff]   ;;  %v498_v52 = vld [vmem:[%s1844_s17 + $0x40] sm:$0xff] }
  0x46   : > { %555 = vperm.xlu1 %1590, %v477_v22   ;;  %550 = vperm.xlu0 %1589, %v476_v23   ;;  %v1603_v46 = vld [vmem:[%s1842_s16 + $0x70] sm:$0xff]   ;;  %v1606_v49 = vld [vmem:[%s1842_s16 + $0x38] sm:$0xff]   ;;  %v490_v53 = vld [vmem:[%s1844_s17] sm:$0xff]  ;;  %v522_v59 = vunpack.c.l.bf16 %v498_v52  ;;  %v523_v60 = vunpack.c.h.bf16 %v498_v52 }
  0x47   : > { %v1604_v47 = vld [vmem:[%s1842_s16 + $0x30] sm:$0xff]   ;;  %v499_v55 = vld [vmem:[%s1844_s17 + $0x48] sm:$0xff]  ;;  %v650_v57 = vld [vmem:[%s432_s19] sm:$0x3]  ;;  %v506_v62 = vunpack.c.l.bf16 %v490_v53  ;;  %v507_v63 = vunpack.c.h.bf16 %v490_v53 }
  0x48   : > { %1454 = vmatpush3.bf16.msra.mxu0 %v1596_v32  ;;  %1523 = vmatpush3.bf16.msra.mxu1 %v1596_v32  ;;  %v491_v56 = vld [vmem:[%s1844_s17 + $0x8] sm:$0xff]  ;;  %v493_v1 = vld [vmem:[%s1844_s17 + $0x18] sm:$0xff]  ;;  %v492_v2 = vld [vmem:[%s1844_s17 + $0x10] sm:$0xff]  ;;  %v524_v3 = vunpack.c.l.bf16 %v499_v55  ;;  %v525_v4 = vunpack.c.h.bf16 %v499_v55  ;;  %v1906_v7 = vrot.slane %v650_v57, %v654_v54  ;;  %v1908_v10 = vrot.slane %v650_v57, %v658_v58 }
  0x49   : > { %1455 = vmatprep.subr.bf16.mxu0 %v1597_v34  ;;  %1516 = vmatprep.subr.bf16.mxu1 %v1597_v34  ;;  %v508_v5 = vunpack.c.l.bf16 %v491_v56  ;;  %v509_v6 = vunpack.c.h.bf16 %v491_v56  ;;  %v512_v8 = vunpack.c.l.bf16 %v493_v1  ;;  %v513_v9 = vunpack.c.h.bf16 %v493_v1  ;;  %v501_v12 = vld [vmem:[%s1844_s17 + $0x58] sm:$0xff]  ;;  %v500_v13 = vld [vmem:[%s1844_s17 + $0x50] sm:$0xff] }
  0x4a   : > { %595 = vperm.xlu1 %1590, %v485_v27   ;;  %590 = vperm.xlu0 %1589, %v484_v29   ;;  %v511_v11 = vunpack.c.h.bf16 %v492_v2  ;;  %v510_v24 = vunpack.c.l.bf16 %v492_v2  ;;  %v528_v25 = vunpack.c.l.bf16 %v501_v12  ;;  %v529_v26 = vunpack.c.h.bf16 %v501_v12 }
  0x4b   : > { %v526_v27 = vunpack.c.l.bf16 %v500_v13 }
  0x4c   : > { %1456 = vmatpush3.bf16.msra.mxu0 %v1598_v35  ;;  %1524 = vmatpush3.bf16.msra.mxu1 %v1598_v35 }
  0x4d   : > { %1457 = vmatprep.subr.bf16.mxu0 %v1599_v38  ;;  %1517 = vmatprep.subr.bf16.mxu1 %v1599_v38 }
  0x4e   : > { %565 = vperm.xlu1 %1590, %v479_v31   ;;  %560 = vperm.xlu0 %1589, %v478_v33  }
  0x50   : > { %1458 = vmatpush3.bf16.msra.mxu0 %v1600_v39  ;;  %1525 = vmatpush3.bf16.msra.mxu1 %v1600_v39 }
  0x51   : > { %1459 = vmatprep.subr.bf16.mxu0 %v1601_v42  ;;  %1518 = vmatprep.subr.bf16.mxu1 %v1601_v42  ;;  %v495_v42 = vld [vmem:[%s1844_s17 + $0x28] sm:$0xff] }
  0x52   : > { %605 = vperm.xlu1 %1590, %v487_v36   ;;  %600 = vperm.xlu0 %1589, %v486_v37   ;;  %v516_v53 = vunpack.c.l.bf16 %v495_v42  ;;  %v517_v54 = vunpack.c.h.bf16 %v495_v42 }
  0x54   : > { %1460 = vmatpush3.bf16.msra.mxu0 %v1602_v43  ;;  %1526 = vmatpush3.bf16.msra.mxu1 %v1602_v43 }
  0x55   : > { %1461 = vmatprep.subr.bf16.mxu0 %v1603_v46  ;;  %1519 = vmatprep.subr.bf16.mxu1 %v1603_v46 }
  0x56   : > { %575 = vperm.xlu1 %1590, %v481_v40   ;;  %570 = vperm.xlu0 %1589, %v480_v41   ;;  %v527_v41 = vunpack.c.h.bf16 %v500_v13 }
  0x58   : > { %1462 = vmatpush3.bf16.msra.mxu0 %v1604_v47  ;;  %1527 = vmatpush3.bf16.msra.mxu1 %v1604_v47  ;;  %v494_v47 = vld [vmem:[%s1844_s17 + $0x20] sm:$0xff] }
  0x59   : > { %1463 = vmatprep.subr.bf16.mxu0 %v1605_v48  ;;  %1520 = vmatprep.subr.bf16.mxu1 %v1605_v48  ;;  %v515_v58 = vunpack.c.h.bf16 %v494_v47 }
  0x5a   : > { %615 = vperm.xlu1 %1590, %v489_v44   ;;  %610 = vperm.xlu0 %1589, %v488_v45  }
  0x5c   : > { %1464 = vmatpush3.bf16.msra.mxu0 %v1606_v49  ;;  %1528 = vmatpush3.bf16.msra.mxu1 %v1606_v49 }
  0xbd   : > { %v581_v61 = vpop.permute.xlu1 %580  ;;  %v541_v0 = vpop.permute.xlu0 %540 }
  0xbe   : > { %v634_v14 = vmul.f32 %v581_v61, %v522_v59  ;;  %v635_v15 = vmul.f32 %v581_v61, %v523_v60  ;;  %v618_v16 = vmul.f32 %v541_v0, %v506_v62  ;;  %v619_v17 = vmul.f32 %v541_v0, %v507_v63  ;;  %v503_v59 = vld [vmem:[%s1844_s17 + $0x68] sm:$0xff]  ;;  %v502_v0 = vld [vmem:[%s1844_s17 + $0x60] sm:$0xff] }
  0xbf   : > { %v514_v63 = vunpack.c.l.bf16 %v494_v47  ;;  %v533_v13 = vunpack.c.h.bf16 %v503_v59 }
  0xc0   : > { %v678_v32 = vmul.f32 %v1906_v7, %v634_v14  ;;  %v662_v33 = vmul.f32 %v1906_v7, %v618_v16  ;;  %v663_v36 = vmul.f32 %v1908_v10, %v619_v17  ;;  %v679_v37 = vmul.f32 %v1908_v10, %v635_v15  ;;  %v497_v15 = vld [vmem:[%s1844_s17 + $0x38] sm:$0xff] }
  0xc1   : > { %v586_v18 = vpop.permute.xlu1 %585  ;;  %v546_v19 = vpop.permute.xlu0 %545  ;;  %v530_v14 = vunpack.c.l.bf16 %v502_v0 }
  0xc2   : > { %v636_v20 = vmul.f32 %v586_v18, %v524_v3  ;;  %v637_v21 = vmul.f32 %v586_v18, %v525_v4  ;;  %v620_v22 = vmul.f32 %v546_v19, %v508_v5  ;;  %v621_v23 = vmul.f32 %v546_v19, %v509_v6 }
  0xc3   : > { %v531_v19 = vunpack.c.h.bf16 %v502_v0 }
  0xc4   : > { %v680_v28 = vmul.f32 %v1906_v7, %v636_v20  ;;  %v664_v29 = vmul.f32 %v1906_v7, %v620_v22  ;;  %v665_v30 = vmul.f32 %v1908_v10, %v621_v23  ;;  %v681_v31 = vmul.f32 %v1908_v10, %v637_v21  ;;  %v496_v20 = vld [vmem:[%s1844_s17 + $0x30] sm:$0xff] }
  0xc5   : > { %v556_v34 = vpop.permute.xlu1 %555  ;;  %v551_v35 = vpop.permute.xlu0 %550 }
  0xc6   : > { %v624_v38 = vmul.f32 %v556_v34, %v512_v8  ;;  %v625_v39 = vmul.f32 %v556_v34, %v513_v9  ;;  %v623_v40 = vmul.f32 %v551_v35, %v511_v11  ;;  %v695_v43 = vpack.c.bf16 %v665_v30, %v663_v36 }
  0xc7   : > { %v703_v44 = vpack.c.bf16 %v681_v31, %v679_v37  ;;  %v702_v45 = vpack.c.bf16 %v680_v28, %v678_v32  ;;  %v694_v46 = vpack.c.bf16 %v664_v29, %v662_v33  ;;  %v622_v49 = vmul.f32 %v551_v35, %v510_v24  ;;  %v505_v33 = vld [vmem:[%s1844_s17 + $0x78] sm:$0xff] }
  0xc8   : > { %v669_v48 = vmul.f32 %v1908_v10, %v625_v39  ;;  %v667_v50 = vmul.f32 %v1908_v10, %v623_v40  ;;  %886 = vmatprep.mubr.bf16.mxu0 %v695_v43  ;;  %v668_v60 = vmul.f32 %v1906_v7, %v624_v38  ;;  %v532_v9 = vunpack.c.l.bf16 %v503_v59  ;;  %v504_v38 = vld [vmem:[%s1844_s17 + $0x70] sm:$0xff] }
  0xc9   : > { %918 = vmatprep.mubr.bf16.mxu1 %v703_v44  ;;  %v596_v51 = vpop.permute.xlu1 %595  ;;  %v591_v52 = vpop.permute.xlu0 %590  ;;  %887 = vmatmul.mubr.bf16.vlgmr.msra.gmra.mrb[0].mxu0 %v694_v46  ;;  %v666_v1 = vmul.f32 %v1906_v7, %v622_v49  ;;  %v521_v28 = vunpack.c.h.bf16 %v497_v15  ;;  %v519_v32 = vunpack.c.h.bf16 %v496_v20  ;;  %v518_v37 = vunpack.c.l.bf16 %v496_v20 }
  0xca   : > { %919 = vmatmul.mubr.bf16.vlgmr.msra.gmra.mrb[0].mxu1 %v702_v45  ;;  %v640_v55 = vmul.f32 %v596_v51, %v528_v25  ;;  %v641_v56 = vmul.f32 %v596_v51, %v529_v26  ;;  %v638_v57 = vmul.f32 %v591_v52, %v526_v27  ;;  %v639_v61 = vmul.f32 %v591_v52, %v527_v41 }
  0xcb   : > { %v697_v62 = vpack.c.bf16 %v669_v48, %v667_v50  ;;  %v696_v24 = vpack.c.bf16 %v668_v60, %v666_v1  ;;  %v520_v27 = vunpack.c.l.bf16 %v497_v15  ;;  %v536_v46 = vunpack.c.l.bf16 %v505_v33  ;;  %v710_v15 = vld [vmem:[#allocation2] sm:$0xff] }
  0xcc   : > { %v684_v2 = vmul.f32 %v1906_v7, %v640_v55  ;;  %v685_v3 = vmul.f32 %v1908_v10, %v641_v56  ;;  %v682_v4 = vmul.f32 %v1906_v7, %v638_v57  ;;  %v683_v5 = vmul.f32 %v1908_v10, %v639_v61 }
  0xcd   : > { %894 = vmatprep.mubr.bf16.mxu0 %v697_v62  ;;  %v566_v6 = vpop.permute.xlu1 %565  ;;  %v561_v8 = vpop.permute.xlu0 %560  ;;  %v537_v49 = vunpack.c.h.bf16 %v505_v33  ;;  %v534_v50 = vunpack.c.l.bf16 %v504_v38  ;;  %v712_v33 = vld [vmem:[#allocation2 + $0x10] sm:$0xff] }
  0xce   : > { %v629_v11 = vmul.f32 %v566_v6, %v517_v54  ;;  %v627_v12 = vmul.f32 %v561_v8, %v515_v58  ;;  %v628_v16 = vmul.f32 %v566_v6, %v516_v53  ;;  %v705_v17 = vpack.c.bf16 %v685_v3, %v683_v5 }
  0xcf   : > { %v704_v18 = vpack.c.bf16 %v684_v2, %v682_v4  ;;  %v626_v22 = vmul.f32 %v561_v8, %v514_v63  ;;  %v535_v54 = vunpack.c.h.bf16 %v504_v38 }
  0xd0   : > { %v673_v21 = vmul.f32 %v1908_v10, %v629_v11  ;;  %v671_v23 = vmul.f32 %v1908_v10, %v627_v12  ;;  %926 = vmatprep.mubr.bf16.mxu1 %v705_v17  ;;  %v672_v34 = vmul.f32 %v1906_v7, %v628_v16  ;;  %v718_v17 = vld [vmem:[#allocation2 + $0x40] sm:$0xff] }
  0xd1   : > { %v606_v25 = vpop.permute.xlu1 %605  ;;  %v601_v26 = vpop.permute.xlu0 %600  ;;  %895 = vmatmul.mubr.bf16.gmra.mrb[4].mxu0 %v696_v24  ;;  %v670_v39 = vmul.f32 %v1906_v7, %v626_v22 }
  0xd2   : > { %v644_v29 = vmul.f32 %v606_v25, %v532_v9  ;;  %v645_v30 = vmul.f32 %v606_v25, %v533_v13  ;;  %927 = vmatmul.mubr.bf16.gmra.mrb[4].mxu1 %v704_v18  ;;  %v642_v31 = vmul.f32 %v601_v26, %v530_v14  ;;  %v643_v35 = vmul.f32 %v601_v26, %v531_v19 }
  0xd3   : > { %v699_v36 = vpack.c.bf16 %v673_v21, %v671_v23  ;;  %v698_v58 = vpack.c.bf16 %v672_v34, %v670_v39  ;;  %v719_v23 = vld [vmem:[#allocation2 + $0x48] sm:$0xff] }
  0xd4   : > { %v688_v40 = vmul.f32 %v1906_v7, %v644_v29  ;;  %v689_v41 = vmul.f32 %v1908_v10, %v645_v30  ;;  %v686_v42 = vmul.f32 %v1906_v7, %v642_v31  ;;  %v687_v43 = vmul.f32 %v1908_v10, %v643_v35  ;;  %v720_v35 = vld [vmem:[#allocation2 + $0x50] sm:$0xff] }
  0xd5   : > { %902 = vmatprep.mubr.bf16.mxu0 %v699_v36  ;;  %v576_v44 = vpop.permute.xlu1 %575  ;;  %v571_v45 = vpop.permute.xlu0 %570 }
  0xd6   : > { %v633_v47 = vmul.f32 %v576_v44, %v521_v28  ;;  %v631_v48 = vmul.f32 %v571_v45, %v519_v32  ;;  %v632_v51 = vmul.f32 %v576_v44, %v520_v27  ;;  %v707_v52 = vpack.c.bf16 %v689_v41, %v687_v43  ;;  %v713_v41 = vld [vmem:[#allocation2 + $0x18] sm:$0xff] }
  0xd7   : > { %v706_v53 = vpack.c.bf16 %v688_v40, %v686_v42  ;;  %v630_v56 = vmul.f32 %v571_v45, %v518_v37  ;;  %v721_v43 = vld [vmem:[#allocation2 + $0x58] sm:$0xff] }
  0xd8   : > { %v677_v55 = vmul.f32 %v1908_v10, %v633_v47  ;;  %v675_v57 = vmul.f32 %v1908_v10, %v631_v48  ;;  %934 = vmatprep.mubr.bf16.mxu1 %v707_v52  ;;  %v676_v0 = vmul.f32 %v1906_v7, %v632_v51 }
  0xd9   : > { %v616_v59 = vpop.permute.xlu1 %615  ;;  %v611_v60 = vpop.permute.xlu0 %610  ;;  %903 = vmatmul.mubr.bf16.gmra.mrb[8].mxu0 %v698_v58  ;;  %v674_v3 = vmul.f32 %v1906_v7, %v630_v56 }
  0xda   : > { %v648_v61 = vmul.f32 %v616_v59, %v536_v46  ;;  %v649_v62 = vmul.f32 %v616_v59, %v537_v49  ;;  %935 = vmatmul.mubr.bf16.gmra.mrb[8].mxu1 %v706_v53  ;;  %v646_v63 = vmul.f32 %v611_v60, %v534_v50  ;;  %v647_v1 = vmul.f32 %v611_v60, %v535_v54  ;;  %v714_v53 = vld [vmem:[#allocation2 + $0x20] sm:$0xff] }
  0xdb   : > { %v701_v2 = vpack.c.bf16 %v677_v55, %v675_v57  ;;  %v700_v12 = vpack.c.bf16 %v676_v0, %v674_v3  ;;  %v722_v55 = vld [vmem:[#allocation2 + $0x60] sm:$0xff] }
  0xdc   : > { %v692_v4 = vmul.f32 %v1906_v7, %v648_v61  ;;  %v693_v5 = vmul.f32 %v1908_v10, %v649_v62  ;;  %v690_v6 = vmul.f32 %v1906_v7, %v646_v63  ;;  %v691_v8 = vmul.f32 %v1908_v10, %v647_v1  ;;  %v711_v7 = vld [vmem:[#allocation2 + $0x8] sm:$0xff] }
  0xdd   : > { %910 = vmatprep.mubr.bf16.mxu0 %v701_v2  ;;  %v715_v61 = vld [vmem:[#allocation2 + $0x28] sm:$0xff] }
  0xde   : > { %v708_v9 = vpack.c.bf16 %v692_v4, %v690_v6  ;;  %v709_v11 = vpack.c.bf16 %v693_v5, %v691_v8  ;;  %v723_v63 = vld [vmem:[#allocation2 + $0x68] sm:$0xff] }
  0xe0   : > { %942 = vmatprep.mubr.bf16.mxu1 %v709_v11  ;;  %v716_v11 = vld [vmem:[#allocation2 + $0x30] sm:$0xff] }
  0xe1   : > { %911 = vmatmul.mubr.bf16.gmra.mrb[12].mxu0 %v700_v12 }
  0xe2   : > { %943 = vmatmul.mubr.bf16.gmra.mrb[12].mxu1 %v708_v9 }
 0x19c   : > { %v1465_v13 = vpop.f32.mrb[0].mxu0 }
 0x19d   : > { %v1489_v14 = vpop.f32.mrb[0].mxu1  ;;  %v1466_v16 = vpop.f32.mrb[1].mxu0 }
 0x19e   : > { %v1490_v18 = vpop.f32.mrb[1].mxu1  ;;  %v1467_v19 = vadd.f32 %v1466_v16, %v1465_v13  ;;  %v1468_v21 = vpop.f32.mrb[2].mxu0  ;;  %v724_v13 = vld [vmem:[#allocation2 + $0x70] sm:$0xff] }
 0x19f   : > { %v1491_v20 = vadd.f32 %v1490_v18, %v1489_v14  ;;  %v1492_v22 = vpop.f32.mrb[2].mxu1  ;;  %v1469_v10 = vpop.f32.mrb[3].mxu0 }
 0x1a0   : > { %v1493_v24 = vpop.f32.mrb[3].mxu1  ;;  %v951_v25 = vadd.f32 %v1467_v19, %v710_v15  ;;  %v1470_v27 = vadd.f32 %v1469_v10, %v1468_v21  ;;  %v717_v19 = vld [vmem:[#allocation2 + $0x38] sm:$0xff] }
 0x1a1   : > { %v959_v26 = vadd.f32 %v1491_v20, %v718_v17  ;;  %v1494_v28 = vadd.f32 %v1493_v24, %v1492_v22  ;;  %v725_v21 = vld [vmem:[#allocation2 + $0x78] sm:$0xff] }
 0x1a2   : > { %968 = vst.msk [vmem:[#allocation2] sm:$0xff] %vm967_vm1, %v951_v25  ;;  %v952_v29 = vadd.f32 %v1470_v27, %v711_v7 }
 0x1a3   : > { %976 = vst.msk [vmem:[#allocation2 + $0x40] sm:$0xff] %vm967_vm1, %v959_v26  ;;  %v960_v30 = vadd.f32 %v1494_v28, %v719_v23  ;;  %v1972_v28 = vld [vmem:[%s2209_s4] ss:$0 sm:$0xff] (!%p1444_p0) }
 0x1a4   : > { %969 = vst.msk [vmem:[#allocation2 + $0x8] sm:$0xff] %vm967_vm1, %v952_v29  ;;  %v1471_v31 = vpop.f32.mrb[4].mxu0 }
 0x1a5   : > { %977 = vst.msk [vmem:[#allocation2 + $0x48] sm:$0xff] %vm967_vm1, %v960_v30  ;;  %v1495_v32 = vpop.f32.mrb[4].mxu1  ;;  %v1472_v34 = vpop.f32.mrb[5].mxu0 }
 0x1a6   : > { %v1496_v36 = vpop.f32.mrb[5].mxu1  ;;  %v1473_v37 = vadd.f32 %v1472_v34, %v1471_v31  ;;  %v1474_v39 = vpop.f32.mrb[6].mxu0 }
 0x1a7   : > { %v1497_v38 = vadd.f32 %v1496_v36, %v1495_v32  ;;  %v1498_v40 = vpop.f32.mrb[6].mxu1  ;;  %v1475_v42 = vpop.f32.mrb[7].mxu0 }
 0x1a8   : > { %v1499_v44 = vpop.f32.mrb[7].mxu1  ;;  %v953_v45 = vadd.f32 %v1473_v37, %v712_v33  ;;  %v1476_v47 = vadd.f32 %v1475_v42, %v1474_v39 }
 0x1a9   : > { %v961_v46 = vadd.f32 %v1497_v38, %v720_v35  ;;  %v1500_v48 = vadd.f32 %v1499_v44, %v1498_v40  ;;  %v988_v29 = vld [vmem:[#allocation2] sm:$0xff] (!%p1444_p0) }
 0x1aa   : > { %970 = vst.msk [vmem:[#allocation2 + $0x10] sm:$0xff] %vm967_vm1, %v953_v45  ;;  %v954_v49 = vadd.f32 %v1476_v47, %v713_v41  ;;  %v1978_v31 = vadd.f32 (!%p1444_p0), %v1972_v28, %v988_v29 }
 0x1ab   : > { %978 = vst.msk [vmem:[#allocation2 + $0x50] sm:$0xff] %vm967_vm1, %v961_v46  ;;  %v962_v50 = vadd.f32 %v1500_v48, %v721_v43  ;;  %v989_v33 = vld [vmem:[#allocation2 + $0x8] sm:$0xff] (!%p1444_p0) }
 0x1ac   : > { %971 = vst.msk [vmem:[#allocation2 + $0x18] sm:$0xff] %vm967_vm1, %v954_v49  ;;  %v1477_v51 = vpop.f32.mrb[8].mxu0  ;;  %v1984_v36 = vadd.f32 (!%p1444_p0), %v1972_v28, %v989_v33  ;;  %v1043_v39 = vmul.f32 (!%p1444_p0), 1.442695, %v1978_v31 }
 0x1ad   : > { %979 = vst.msk [vmem:[#allocation2 + $0x58] sm:$0xff] %vm967_vm1, %v962_v50  ;;  %v1501_v52 = vpop.f32.mrb[8].mxu1  ;;  %v1478_v54 = vpop.f32.mrb[9].mxu0  ;;  %v997_v50 = vld [vmem:[#allocation2 + $0x48] sm:$0xff] (!%p1444_p0) }
 0x1ae   : > { %v1502_v56 = vpop.f32.mrb[9].mxu1  ;;  %v1479_v57 = vadd.f32 %v1478_v54, %v1477_v51  ;;  %v1480_v59 = vpop.f32.mrb[10].mxu0  ;;  %v1045_v42 = vmul.f32 (!%p1444_p0), 1.442695, %v1984_v36  ;;  %v996_v51 = vld [vmem:[#allocation2 + $0x40] sm:$0xff] (!%p1444_p0) }
 0x1af   : > { %v1503_v58 = vadd.f32 %v1502_v56, %v1501_v52  ;;  %v1504_v60 = vpop.f32.mrb[10].mxu1  ;;  %v1481_v62 = vpop.f32.mrb[11].mxu0 }
 0x1b0   : > { %v1505_v0 = vpop.f32.mrb[11].mxu1  ;;  %v955_v1 = vadd.f32 %v1479_v57, %v714_v53  ;;  %v1482_v3 = vadd.f32 %v1481_v62, %v1480_v59  ;;  %v2006_v53 = vadd.f32 (!%p1444_p0), %v1972_v28, %v997_v50  ;;  %v1027_v50 = vld [vmem:[%s1826_s18] sm:$0xff] (!%p1444_p0) }
 0x1b1   : > { %v963_v2 = vadd.f32 %v1503_v58, %v722_v55  ;;  %v1506_v4 = vadd.f32 %v1505_v0, %v1504_v60  ;;  %v990_v27 = vld [vmem:[#allocation2 + $0x10] sm:$0xff] (!%p1444_p0)  ;;  %v2010_v55 = vadd.f32 (!%p1444_p0), %v1972_v28, %v996_v51 }
 0x1b2   : > { %972 = vst.msk [vmem:[#allocation2 + $0x20] sm:$0xff] %vm967_vm1, %v955_v1  ;;  %v956_v5 = vadd.f32 %v1482_v3, %v715_v61  ;;  %v1975_v30 = vadd.f32 (!%p1444_p0), %v1972_v28, %v990_v27  ;;  %v998_v57 = vld [vmem:[#allocation2 + $0x50] sm:$0xff] (!%p1444_p0)  ;;  %v1061_v59 = vmul.f32 (!%p1444_p0), 1.442695, %v2006_v53 }
 0x1b3   : > { %980 = vst.msk [vmem:[#allocation2 + $0x60] sm:$0xff] %vm967_vm1, %v963_v2  ;;  %v964_v6 = vadd.f32 %v1506_v4, %v723_v63  ;;  %v991_v32 = vld [vmem:[#allocation2 + $0x18] sm:$0xff] (!%p1444_p0)  ;;  %v1059_v62 = vmul.f32 (!%p1444_p0), 1.442695, %v2010_v55  ;;  %v2019_v63 = vadd.f32 (!%p1444_p0), %v1972_v28, %v998_v57 }
 0x1b4   : > { %973 = vst.msk [vmem:[#allocation2 + $0x28] sm:$0xff] %vm967_vm1, %v956_v5  ;;  %v1483_v8 = vpop.f32.mrb[12].mxu0  ;;  %v1981_v35 = vadd.f32 (!%p1444_p0), %v1972_v28, %v991_v32  ;;  %v1047_v38 = vmul.f32 (!%p1444_p0), 1.442695, %v1975_v30  ;;  %v999_v56 = vld [vmem:[#allocation2 + $0x58] sm:$0xff] (!%p1444_p0) }
 0x1b5   : > { %981 = vst.msk [vmem:[#allocation2 + $0x68] sm:$0xff] %vm967_vm1, %v964_v6  ;;  %v1507_v9 = vpop.f32.mrb[12].mxu1  ;;  %v1484_v12 = vpop.f32.mrb[13].mxu0  ;;  %v2014_v60 = vadd.f32 (!%p1444_p0), %v1972_v28, %v999_v56  ;;  %v1063_v6 = vmul.f32 (!%p1444_p0), 1.442695, %v2019_v63  ;;  %v1030_v56 = vld [vmem:[%s1826_s18 + $0x18] sm:$0xff] (!%p1444_p0) }
 0x1b6   : > { %v1508_v14 = vpop.f32.mrb[13].mxu1  ;;  %v1485_v15 = vadd.f32 %v1484_v12, %v1483_v8  ;;  %v1486_v17 = vpop.f32.mrb[14].mxu0  ;;  %v1049_v41 = vmul.f32 (!%p1444_p0), 1.442695, %v1981_v35  ;;  %1607 = vpow2.f32 (!%p1444_p0), %v1047_v38 }
 0x1b7   : > { %v1509_v16 = vadd.f32 %v1508_v14, %v1507_v9  ;;  %v1510_v18 = vpop.f32.mrb[14].mxu1  ;;  %v1487_v20 = vpop.f32.mrb[15].mxu0  ;;  %987 = sbr.rel (%p1444_p0) target bundleno = 634 (0x27a), region = 90  ;;  %1609 = vpow2.f32 (!%p1444_p0), %v1043_v39  ;;  %v1065_v4 = vmul.f32 (!%p1444_p0), 1.442695, %v2014_v60 }
 0x1b8   : > { %v1511_v22 = vpop.f32.mrb[15].mxu1  ;;  %v957_v7 = vadd.f32 %v1485_v15, %v716_v11  ;;  %v1488_v23 = vadd.f32 %v1487_v20, %v1486_v17  ;;  %1611 = vpow2.f32 (!%p1444_p0), %v1049_v41 }
 0x1b9   : > { %v965_v10 = vadd.f32 %v1509_v16, %v724_v13  ;;  %v1512_v24 = vadd.f32 %v1511_v22, %v1510_v18  ;;  %v992_v37 = vld [vmem:[#allocation2 + $0x20] sm:$0xff] (!%p1444_p0)  ;;  %1613 = vpow2.f32 (!%p1444_p0), %v1045_v42 }
 0x1ba   : > { %974 = vst.msk [vmem:[#allocation2 + $0x30] sm:$0xff] %vm967_vm1, %v957_v7  ;;  %v958_v25 = vadd.f32 %v1488_v23, %v717_v19  ;;  %v1994_v43 = vadd.f32 (!%p1444_p0), %v1972_v28, %v992_v37  ;;  %v1000_v2 = vld [vmem:[#allocation2 + $0x60] sm:$0xff] (!%p1444_p0) }
 0x1bb   : > { %982 = vst.msk [vmem:[#allocation2 + $0x70] sm:$0xff] %vm967_vm1, %v965_v10  ;;  %v966_v26 = vadd.f32 %v1512_v24, %v725_v21  ;;  %v993_v34 = vld [vmem:[#allocation2 + $0x28] sm:$0xff] (!%p1444_p0)  ;;  %v2029_v8 = vadd.f32 (!%p1444_p0), %v1972_v28, %v1000_v2 }
 0x1bc   : > { %975 = vst.msk [vmem:[#allocation2 + $0x38] sm:$0xff] %vm967_vm1, %v958_v25  ;;  %v1989_v40 = vadd.f32 (!%p1444_p0), %v1972_v28, %v993_v34  ;;  %v1051_v48 = vmul.f32 (!%p1444_p0), 1.442695, %v1994_v43  ;;  %v1001_v0 = vld [vmem:[#allocation2 + $0x68] sm:$0xff] (!%p1444_p0) }
 0x1bd   : > { %983 = vst.msk [vmem:[#allocation2 + $0x78] sm:$0xff] %vm967_vm1, %v966_v26  ;;  %v2024_v5 = vadd.f32 (!%p1444_p0), %v1972_v28, %v1001_v0  ;;  %v1067_v16 = vmul.f32 (!%p1444_p0), 1.442695, %v2029_v8  ;;  %v1032_v2 = vld [vmem:[%s1826_s18 + $0x28] sm:$0xff] (!%p1444_p0) }
 0x1be   : > { %v1053_v46 = vmul.f32 1.442695, %v1989_v40 }
 0x1bf   : > { %v1069_v14 = vmul.f32 1.442695, %v2024_v5 }
 0x1c0   : > { %1615 = vpow2.f32 %v1053_v46  ;;  %v1608_v58 = vpop.eup %1607  ;;  %v1028_v46 = vld [vmem:[%s1826_s18 + $0x8] sm:$0xff] }
 0x1c1   : > { %v994_v45 = vld [vmem:[#allocation2 + $0x30] sm:$0xff]  ;;  %1617 = vpow2.f32 %v1051_v48  ;;  %v1610_v61 = vpop.eup %1609  ;;  %1095 = vrot.lane.b32.xlu1 %v1608_v58, %s1697_s23 }
 0x1c2   : > { %v2002_v49 = vadd.f32 %v1972_v28, %v994_v45  ;;  %v1612_v1 = vpop.eup %1611  ;;  %1091 = vrot.lane.b32.xlu0 %v1610_v61, %s1697_s23  ;;  %v1002_v12 = vld [vmem:[#allocation2 + $0x70] sm:$0xff] }
 0x1c3   : > { %v995_v44 = vld [vmem:[#allocation2 + $0x38] sm:$0xff]  ;;  %v1614_v3 = vpop.eup %1613  ;;  %v2039_v17 = vadd.f32 %v1972_v28, %v1002_v12  ;;  %v1029_v58 = vld [vmem:[%s1826_s18 + $0x10] sm:$0xff] }
 0x1c4   : > { %v1998_v47 = vadd.f32 %v1972_v28, %v995_v44  ;;  %v1055_v54 = vmul.f32 1.442695, %v2002_v49  ;;  %v1003_v9 = vld [vmem:[#allocation2 + $0x78] sm:$0xff] }
 0x1c5   : > { %1097 = vrot.lane.b32.xlu1 %v1612_v1, %s1697_s23  ;;  %v2034_v15 = vadd.f32 %v1972_v28, %v1003_v9  ;;  %v1071_v21 = vmul.f32 1.442695, %v2039_v17 }
 0x1c6   : > { %v1057_v52 = vmul.f32 1.442695, %v1998_v47  ;;  %1093 = vrot.lane.b32.xlu0 %v1614_v3, %s1697_s23 }
 0x1c7   : > { %v1073_v20 = vmul.f32 1.442695, %v2034_v15 }
 0x1c8   : > { %1619 = vpow2.f32 %v1057_v52 }
 0x1c9   : > { %1621 = vpow2.f32 %v1055_v54 }
 0x1ca   : > { %1623 = vpow2.f32 %v1061_v59  ;;  %v1616_v11 = vpop.eup %1615 }
 0x1cb   : > { %1625 = vpow2.f32 %v1059_v62  ;;  %v1618_v13 = vpop.eup %1617  ;;  %1101 = vrot.lane.b32.xlu1 %v1616_v11, %s1697_s23 }
 0x1cc   : > { %1627 = vpow2.f32 %v1065_v4  ;;  %1099 = vrot.lane.b32.xlu0 %v1618_v13, %s1697_s23  ;;  %v1031_v4 = vld [vmem:[%s1826_s18 + $0x20] sm:$0xff] }
 0x1cd   : > { %1629 = vpow2.f32 %v1063_v6 }
 0x1ce   : > { %1631 = vpow2.f32 %v1069_v14 }
 0x1cf   : > { %1633 = vpow2.f32 %v1067_v16 }
 0x1d0   : > { %1635 = vpow2.f32 %v1073_v20  ;;  %v1033_v20 = vld [vmem:[%s1826_s18 + $0x30] sm:$0xff] }
 0x1d1   : > { %1637 = vpow2.f32 %v1071_v21 }
 0x1d2   : > { %v1620_v18 = vpop.eup %1619 }
 0x1d3   : > { %v1622_v19 = vpop.eup %1621  ;;  %1105 = vrot.lane.b32.xlu1 %v1620_v18, %s1697_s23  ;;  %v1034_v18 = vld [vmem:[%s1826_s18 + $0x38] sm:$0xff] }
 0x1d4   : > { %v1624_v22 = vpop.eup %1623  ;;  %1103 = vrot.lane.b32.xlu0 %v1622_v19, %s1697_s23 }
 0x1d5   : > { %v1626_v7 = vpop.eup %1625 }
 0x1d6   : > { %v1628_v10 = vpop.eup %1627 }
 0x1d7   : > { %1109 = vrot.lane.b32.xlu1 %v1624_v22, %s1697_s23  ;;  %v1630_v23 = vpop.eup %1629 }
 0x1d8   : > { %1107 = vrot.lane.b32.xlu0 %v1626_v7, %s1697_s23  ;;  %v1632_v24 = vpop.eup %1631 }
 0x1d9   : > { %v1634_v25 = vpop.eup %1633 }
 0x1da   : > { %v1636_v26 = vpop.eup %1635 }
 0x1db   : > { %1113 = vrot.lane.b32.xlu1 %v1628_v10, %s1697_s23  ;;  %v1638_v27 = vpop.eup %1637 }
 0x1dc   : > { %1111 = vrot.lane.b32.xlu0 %v1630_v23, %s1697_s23 }
 0x1df   : > { %1117 = vrot.lane.b32.xlu1 %v1632_v24, %s1697_s23 }
 0x1e0   : > { %1115 = vrot.lane.b32.xlu0 %v1634_v25, %s1697_s23 }
 0x1e3   : > { %1121 = vrot.lane.b32.xlu1 %v1636_v26, %s1697_s23  ;;  %v1036_v26 = vld [vmem:[%s1826_s18 + $0x48] sm:$0xff] }
 0x1e4   : > { %1119 = vrot.lane.b32.xlu0 %v1638_v27, %s1697_s23 }
 0x1e7   : > { %1189 = vrot.lane.b32.xlu1 %v1984_v36, %s1698_s12 }
 0x1e8   : > { %1187 = vrot.lane.b32.xlu0 %v1978_v31, %s1698_s12 }
 0x1eb   : > { %1193 = vrot.lane.b32.xlu1 %v1981_v35, %s1698_s12 }
 0x1ec   : > { %1191 = vrot.lane.b32.xlu0 %v1975_v30, %s1698_s12 }
 0x1ef   : > { %1197 = vrot.lane.b32.xlu1 %v1989_v40, %s1698_s12 }
 0x1f0   : > { %1195 = vrot.lane.b32.xlu0 %v1994_v43, %s1698_s12 }
 0x1f3   : > { %1201 = vrot.lane.b32.xlu1 %v1998_v47, %s1698_s12 }
 0x1f4   : > { %1199 = vrot.lane.b32.xlu0 %v2002_v49, %s1698_s12 }
 0x1f7   : > { %1205 = vrot.lane.b32.xlu1 %v2006_v53, %s1698_s12 }
 0x1f8   : > { %1203 = vrot.lane.b32.xlu0 %v2010_v55, %s1698_s12 }
 0x1fb   : > { %1209 = vrot.lane.b32.xlu1 %v2014_v60, %s1698_s12 }
 0x1fc   : > { %1207 = vrot.lane.b32.xlu0 %v2019_v63, %s1698_s12 }
 0x1ff   : > { %1213 = vrot.lane.b32.xlu1 %v2024_v5, %s1698_s12 }
 0x200   : > { %1211 = vrot.lane.b32.xlu0 %v2029_v8, %s1698_s12 }
 0x203   : > { %1217 = vrot.lane.b32.xlu1 %v2034_v15, %s1698_s12 }
 0x204   : > { %1215 = vrot.lane.b32.xlu0 %v2039_v17, %s1698_s12 }
 0x233   : > { %v1096_v28 = vpop.permute.xlu1 %1095 }
 0x234   : > { %v1092_v29 = vpop.permute.xlu0 %1091  ;;  %v1141_v0 = vmul.f32 %v1096_v28, %v1029_v58  ;;  %v1035_v28 = vld [vmem:[%s1826_s18 + $0x40] sm:$0xff] }
 0x235   : > { %v1139_v54 = vmul.f32 %v1092_v29, %v1027_v50 }
 0x236   : > { %v1157_v14 = vadd.f32 %v1141_v0, %v1975_v30  ;;  %v1040_v0 = vld [vmem:[%s1826_s18 + $0x68] sm:$0xff] }
 0x237   : > { %v1098_v32 = vpop.permute.xlu1 %1097  ;;  %v1155_v1 = vadd.f32 %v1139_v54, %v1978_v31 }
 0x238   : > { %v1094_v33 = vpop.permute.xlu0 %1093  ;;  %v1142_v61 = vmul.f32 %v1098_v32, %v1030_v56 }
 0x239   : > { %v1140_v52 = vmul.f32 %v1094_v33, %v1028_v46  ;;  %v1038_v46 = vld [vmem:[%s1826_s18 + $0x58] sm:$0xff] }
 0x23a   : > { %v1158_v13 = vadd.f32 %v1142_v61, %v1981_v35 }
 0x23b   : > { %v1156_v62 = vadd.f32 %v1140_v52, %v1984_v36  ;;  %v1037_v52 = vld [vmem:[%s1826_s18 + $0x50] sm:$0xff] }
 0x23d   : > { %v1102_v34 = vpop.permute.xlu1 %1101 }
 0x23e   : > { %v1100_v37 = vpop.permute.xlu0 %1099  ;;  %v1144_v36 = vmul.f32 %v1102_v34, %v1032_v2  ;;  %v1039_v2 = vld [vmem:[%s1826_s18 + $0x60] sm:$0xff] }
 0x23f   : > { %v1143_v16 = vmul.f32 %v1100_v37, %v1031_v4 }
 0x240   : > { %v1160_v10 = vadd.f32 %v1144_v36, %v1989_v40  ;;  %v1041_v36 = vld [vmem:[%s1826_s18 + $0x70] sm:$0xff] }
 0x241   : > { %v1159_v24 = vadd.f32 %v1143_v16, %v1994_v43 }
 0x245   : > { %v1106_v38 = vpop.permute.xlu1 %1105 }
 0x246   : > { %v1104_v39 = vpop.permute.xlu0 %1103  ;;  %v1146_v30 = vmul.f32 %v1106_v38, %v1034_v18 }
 0x247   : > { %v1145_v25 = vmul.f32 %v1104_v39, %v1033_v20 }
 0x248   : > { %v1162_v34 = vadd.f32 %v1146_v30, %v1998_v47 }
 0x249   : > { %v1110_v41 = vpop.permute.xlu1 %1109  ;;  %v1161_v38 = vadd.f32 %v1145_v25, %v2002_v49 }
 0x24a   : > { %v1108_v42 = vpop.permute.xlu0 %1107  ;;  %v1148_v43 = vmul.f32 %v1110_v41, %v1036_v26 }
 0x24b   : > { %v1147_v39 = vmul.f32 %v1108_v42, %v1035_v28 }
 0x24c   : > { %v1164_v58 = vadd.f32 %v1148_v43, %v2006_v53 }
 0x24d   : > { %v2070_v44 = vpop.permute.xlu1 %1113  ;;  %v1163_v61 = vadd.f32 %v1147_v39, %v2010_v55 }
 0x24e   : > { %v2072_v45 = vpop.permute.xlu0 %1111  ;;  %v1150_v49 = vmul.f32 %v2070_v44, %v1038_v46 }
 0x251   : > { %v2075_v48 = vpop.permute.xlu1 %1117 }
 0x252   : > { %v2078_v51 = vpop.permute.xlu0 %1115  ;;  %v1152_v55 = vmul.f32 %v2075_v48, %v1040_v0 }
 0x254   : > { %v1168_v16 = vadd.f32 %v1152_v55, %v2024_v5 }
 0x255   : > { %v2081_v57 = vpop.permute.xlu1 %1121 }
 0x256   : > { %v2084_v59 = vpop.permute.xlu0 %1119 }
 0x259   : > { %v1190_v3 = vpop.permute.xlu1 %1189 }
 0x25a   : > { %v1237_v6 = vsel %vm1235_vm2, %v1156_v62, %v1190_v3  ;;  %v1188_v9 = vpop.permute.xlu0 %1187  ;;  %v1149_v62 = vmul.f32 %v2072_v45, %v1037_v52 }
 0x25b   : > { %v1253_v11 = vsel %vm967_vm1, %v1237_v6, %v1190_v3  ;;  %v1236_v12 = vsel %vm1235_vm2, %v1155_v1, %v1188_v9  ;;  %v1166_v6 = vadd.f32 %v1150_v49, %v2014_v60 }
 0x25c   : > { %1270 = vst.msk [vmem:[%s1837_s7 + $0x8] sm:$0xff] %vm1268_vm3, %v1253_v11  ;;  %v1252_v31 = vsel %vm967_vm1, %v1236_v12, %v1188_v9  ;;  %v1165_v9 = vadd.f32 %v1149_v62, %v2019_v63  ;;  %v1151_v11 = vmul.f32 %v2078_v51, %v1039_v2  ;;  %v1042_v12 = vld [vmem:[%s1826_s18 + $0x78] sm:$0xff] }
 0x25d   : > { %1269 = vst.msk [vmem:[%s1837_s7] sm:$0xff] %vm1268_vm3, %v1252_v31  ;;  %v1194_v19 = vpop.permute.xlu1 %1193  ;;  %v1154_v63 = vmul.f32 %v2081_v57, %v1042_v12 }
 0x25e   : > { %v1239_v21 = vsel %vm1235_vm2, %v1158_v13, %v1194_v19  ;;  %v1192_v35 = vpop.permute.xlu0 %1191  ;;  %v1167_v18 = vadd.f32 %v1151_v11, %v2029_v8 }
 0x25f   : > { %v1255_v22 = vsel %vm967_vm1, %v1239_v21, %v1194_v19  ;;  %v1238_v7 = vsel %vm1235_vm2, %v1157_v14, %v1192_v35  ;;  %v1153_v19 = vmul.f32 %v2084_v59, %v1041_v36 }
 0x260   : > { %1272 = vst.msk [vmem:[%s1837_s7 + $0x18] sm:$0xff] %vm1268_vm3, %v1255_v22  ;;  %v1254_v23 = vsel %vm967_vm1, %v1238_v7, %v1192_v35  ;;  %v1170_v22 = vadd.f32 %v1154_v63, %v2034_v15 }
 0x261   : > { %1271 = vst.msk [vmem:[%s1837_s7 + $0x10] sm:$0xff] %vm1268_vm3, %v1254_v23  ;;  %v1198_v27 = vpop.permute.xlu1 %1197  ;;  %v1169_v59 = vadd.f32 %v1153_v19, %v2039_v17 }
 0x262   : > { %v1241_v29 = vsel %vm1235_vm2, %v1160_v10, %v1198_v27  ;;  %v1196_v40 = vpop.permute.xlu0 %1195 }
 0x263   : > { %v1257_v32 = vsel %vm967_vm1, %v1241_v29, %v1198_v27  ;;  %v1240_v33 = vsel %vm1235_vm2, %v1159_v24, %v1196_v40 }
 0x264   : > { %1274 = vst.msk [vmem:[%s1837_s7 + $0x28] sm:$0xff] %vm1268_vm3, %v1257_v32  ;;  %v1256_v37 = vsel %vm967_vm1, %v1240_v33, %v1196_v40 }
 0x265   : > { %1273 = vst.msk [vmem:[%s1837_s7 + $0x20] sm:$0xff] %vm1268_vm3, %v1256_v37  ;;  %v1202_v50 = vpop.permute.xlu1 %1201 }
 0x266   : > { %v1243_v54 = vsel %vm1235_vm2, %v1162_v34, %v1202_v50  ;;  %v1200_v47 = vpop.permute.xlu0 %1199 }
 0x267   : > { %v1259_v41 = vsel %vm967_vm1, %v1243_v54, %v1202_v50  ;;  %v1242_v56 = vsel %vm1235_vm2, %v1161_v38, %v1200_v47 }
 0x268   : > { %1276 = vst.msk [vmem:[%s1837_s7 + $0x38] sm:$0xff] %vm1268_vm3, %v1259_v41  ;;  %v1258_v42 = vsel %vm967_vm1, %v1242_v56, %v1200_v47 }
 0x269   : > { %1275 = vst.msk [vmem:[%s1837_s7 + $0x30] sm:$0xff] %vm1268_vm3, %v1258_v42  ;;  %v1206_v1 = vpop.permute.xlu1 %1205 }
 0x26a   : > { %v1245_v53 = vsel %vm1235_vm2, %v1164_v58, %v1206_v1  ;;  %v1204_v3 = vpop.permute.xlu0 %1203 }
 0x26b   : > { %v1261_v44 = vsel %vm967_vm1, %v1245_v53, %v1206_v1  ;;  %v1244_v4 = vsel %vm1235_vm2, %v1163_v61, %v1204_v3 }
 0x26c   : > { %1278 = vst.msk [vmem:[%s1837_s7 + $0x48] sm:$0xff] %vm1268_vm3, %v1261_v44  ;;  %v1260_v45 = vsel %vm967_vm1, %v1244_v4, %v1204_v3 }
 0x26d   : > { %1277 = vst.msk [vmem:[%s1837_s7 + $0x40] sm:$0xff] %vm1268_vm3, %v1260_v45  ;;  %v1210_v13 = vpop.permute.xlu1 %1209 }
 0x26e   : > { %v1247_v31 = vsel %vm1235_vm2, %v1166_v6, %v1210_v13  ;;  %v1208_v60 = vpop.permute.xlu0 %1207 }
 0x26f   : > { %v1263_v48 = vsel %vm967_vm1, %v1247_v31, %v1210_v13  ;;  %v1246_v14 = vsel %vm1235_vm2, %v1165_v9, %v1208_v60 }
 0x270   : > { %1280 = vst.msk [vmem:[%s1837_s7 + $0x58] sm:$0xff] %vm1268_vm3, %v1263_v48  ;;  %v1262_v51 = vsel %vm967_vm1, %v1246_v14, %v1208_v60 }
 0x271   : > { %1279 = vst.msk [vmem:[%s1837_s7 + $0x50] sm:$0xff] %vm1268_vm3, %v1262_v51  ;;  %v1214_v20 = vpop.permute.xlu1 %1213 }
 0x272   : > { %v1249_v21 = vsel %vm1235_vm2, %v1168_v16, %v1214_v20  ;;  %v1212_v35 = vpop.permute.xlu0 %1211 }
 0x273   : > { %v1265_v5 = vsel %vm967_vm1, %v1249_v21, %v1214_v20  ;;  %v1248_v57 = vsel %vm1235_vm2, %v1167_v18, %v1212_v35 }
 0x274   : > { %1282 = vst.msk [vmem:[%s1837_s7 + $0x68] sm:$0xff] %vm1268_vm3, %v1265_v5  ;;  %v1264_v8 = vsel %vm967_vm1, %v1248_v57, %v1212_v35 }
 0x275   : > { %1281 = vst.msk [vmem:[%s1837_s7 + $0x60] sm:$0xff] %vm1268_vm3, %v1264_v8  ;;  %v1218_v7 = vpop.permute.xlu1 %1217 }
 0x276   : > { %v1251_v10 = vsel %vm1235_vm2, %v1170_v22, %v1218_v7  ;;  %v1216_v30 = vpop.permute.xlu0 %1215 }
 0x277   : > { %v1267_v23 = vsel %vm967_vm1, %v1251_v10, %v1218_v7  ;;  %v1250_v24 = vsel %vm1235_vm2, %v1169_v59, %v1216_v30 }
 0x278   : > { %1284 = vst.msk [vmem:[%s1837_s7 + $0x78] sm:$0xff] %vm1268_vm3, %v1267_v23  ;;  %v1266_v15 = vsel %vm967_vm1, %v1250_v24, %v1216_v30 }
 0x279   : > { %1283 = vst.msk [vmem:[%s1837_s7 + $0x70] sm:$0xff] %vm1268_vm3, %v1266_v15 }
 0x27a PF: > { %s16_s27 = sadd.s32 1, %s1693_s27   ;;  %s2214_s21 = smov %s1673_s22 }
 0x27b   : > { %p13_p1 = scmp.ge.s32.totalorder %s16_s27, 10   ;;  %s2215_s22 = smov %s1785_s10 }
 0x27c   : > { %s2216_s23 = smov %s1685_s25  ;;  %s2217_s24 = smov %s1689_s26 }
 0x27d   : > { %s2218_s25 = smov %s2221_s28  ;;  %s2219_s26 = smov %s2225_s29 }
 0x27e   :  { %15 = sbr.rel (!%p13_p1) target bundleno = 6 (0x6), region = 137 }

// kernel: graph_encoder_forward.2
= control target key start
LH: loop header
LB: loop body
LE: loop exit
PB: predicated region body
PF: predicated region fallthrough
CT: control target
= control target key end

     0   :  { %s1990_s0 = inlined_call_operand.vmem [shape: bf16[512,512], index: 0, kind: input, shape index: {}]   ;;  %s1991_s1 = inlined_call_operand.vmem [shape: f32[512,1], index: 1, kind: input, shape index: {}]   ;;  %s1992_s2 = inlined_call_operand.vmem [shape: f32[1,512], index: 2, kind: input, shape index: {}]   ;;  %s1993_s3 = inlined_call_operand.vmem [shape: bf16[512,16], index: 3, kind: input, shape index: {}]   ;;  %s1994_s4 = inlined_call_operand.vmem [shape: f32[1,16], index: 4, kind: input, shape index: {}]   ;;  %s1995_s5 = inlined_call_operand.vmem [shape: bf16[16,16], index: 5, kind: input, shape index: {}]   ;;  %s1996_s6 = inlined_call_operand.vmem [shape: bf16[512,16], index: 6, kind: output, shape index: {}]  }
   0x1   :  { %1998 = sst [smem:[#allocation5_spill]] %s1990_s0 }
   0x2   :  { %s1693_s21 = smov 0   ;;  %s1695_s22 = smov 0  }
   0x3   :  { %s1697_s23 = smov 0   ;;  %s1699_s24 = smov 0  }
   0x4   :  { %s1701_s25 = smov 0   ;;  %s1703_s26 = smov 0  }
   0x5   :  { %s1705_s27 = smov 0  }
   0x6 LB: > { %s25_s28 = sadd.s32 1, %s1646_s25  ;;  %s28_s29 = sadd.s32 1, %s1650_s26  ;;  %s1654_s27 = sphi %s1705_s27, %s16_s27   ;;  %s1650_s26 = sphi %s1703_s26, %s2007_s26   ;;  %s1646_s25 = sphi %s1701_s25, %s2006_s25   ;;  %s1642_s24 = sphi %s1699_s24, %s2005_s24   ;;  %s1638_s23 = sphi %s1697_s23, %s2004_s23   ;;  %s1634_s22 = sphi %s1695_s22, %s2003_s22   ;;  %s1630_s21 = sphi %s1693_s21, %s2002_s21  }
   0x7   : > { %p26_p0 = scmp.ge.s32.totalorder %s25_s28, 2  ;;  %p44_p1 = scmp.ne.s32.totalorder %s1634_s22, %s1630_s21 }
   0x8   : > { %p45_p2 = scmp.eq.s32.totalorder %s1654_s27, 0  ;;  %s37_s9 = sadd.s32 1, %s1634_s22 }
   0x9   : > { %s2009_s28 = smov (%p26_p0, %s25_s28), 0  ;;  %s2011_s29 = smov (!%p26_p0, %s28_s29), %s1650_s26 }
   0xa   : > { %p46_p3 = por %p45_p2, %p44_p1  ;;  %p30_p4 = scmp.ge.s32.totalorder %s2011_s29, 4 }
   0xb   : > { %s33_s30 = ssub.s32 %s1646_s25, %s2009_s28  ;;  %p1336_p6 = scmp.ge.s32.totalorder %s1654_s27, 8 }
   0xc   : > { %s2013_s29 = smov (%p30_p4, %s2011_s29), 0 }
   0xd   : > { %1999 = sst [smem:[#allocation4_spill]] %s2013_s29  ;;  %s32_s7 = ssub.s32 %s1650_s26, %s2013_s29 }
   0xe   : > { %s34_s8 = sor.u32 %s33_s30, %s32_s7  ;;  %222 = sbr.rel (%p1336_p6) target bundleno = 39 (0x27), region = 24 }
   0xf   : > { %p35_p5 = scmp.eq.s32.totalorder %s34_s8, 0 }
  0x11   : > { %s1744_s10 = scalar_select %p35_p5, %s1634_s22, %s37_s9  }
  0x15   : > { %225 = sbr.rel (!%p46_p3) target bundleno = 39 (0x27), region = 28  ;;  %s227_s11 = sand.u32 (%p46_p3), 1, %s1634_s22  }
  0x16   : > { %s1339_s12 = sshll.u32 (%p46_p3), %s1646_s25, 1  ;;  %s1337_s13 = sshll.u32 (%p46_p3), %s227_s11, 7 }
  0x17   : > { %s1397_s14 = sshll.u32 (%p46_p3), %s1650_s26, 6  ;;  %s2000_s0 = sld [smem:[#allocation5_spill]] (%p46_p3) }
  0x18   : > { %s233_s15 = sadd.s32 (%p46_p3), %s1397_s14, %s1339_s12  ;;  %s229_s20 = scalar_lea.vmem (%p46_p3), [#allocation3], %s1337_s13 }
  0x19   : > { %s1341_s16 = sshll.u32 (%p46_p3), %s233_s15, 2 }
  0x1d   : > { %s1753_s19 = scalar_lea.vmem %s2000_s0, %s1341_s16 }
  0x1e   : > { %v293_v0 = vld [vmem:[%s1753_s19] sm:$0xff]  ;;  %v295_v1 = vld [vmem:[%s1753_s19 + $0x10] sm:$0xff] }
  0x1f   : > { %v297_v2 = vld [vmem:[%s1753_s19 + $0x20] sm:$0xff]  ;;  %294 = vst [vmem:[%s229_s20] sm:$0xff] %v293_v0  ;;  %296 = vst [vmem:[%s229_s20 + $0x8] sm:$0xff] %v295_v1  ;;  %v299_v3 = vld [vmem:[%s1753_s19 + $0x30] sm:$0xff] }
  0x20   : > { %298 = vst [vmem:[%s229_s20 + $0x10] sm:$0xff] %v297_v2  ;;  %v301_v4 = vld [vmem:[%s1753_s19 + $0x40] sm:$0xff]  ;;  %v303_v5 = vld [vmem:[%s1753_s19 + $0x50] sm:$0xff]  ;;  %300 = vst [vmem:[%s229_s20 + $0x18] sm:$0xff] %v299_v3 }
  0x21   : > { %302 = vst [vmem:[%s229_s20 + $0x20] sm:$0xff] %v301_v4  ;;  %304 = vst [vmem:[%s229_s20 + $0x28] sm:$0xff] %v303_v5  ;;  %v305_v6 = vld [vmem:[%s1753_s19 + $0x60] sm:$0xff]  ;;  %v307_v7 = vld [vmem:[%s1753_s19 + $0x70] sm:$0xff] }
  0x22   : > { %v309_v8 = vld [vmem:[%s1753_s19 + $0x80] sm:$0xff]  ;;  %306 = vst [vmem:[%s229_s20 + $0x30] sm:$0xff] %v305_v6  ;;  %308 = vst [vmem:[%s229_s20 + $0x38] sm:$0xff] %v307_v7  ;;  %v311_v9 = vld [vmem:[%s1753_s19 + $0x90] sm:$0xff] }
  0x23   : > { %310 = vst [vmem:[%s229_s20 + $0x40] sm:$0xff] %v309_v8  ;;  %v313_v10 = vld [vmem:[%s1753_s19 + $0xa0] sm:$0xff]  ;;  %v315_v11 = vld [vmem:[%s1753_s19 + $0xb0] sm:$0xff]  ;;  %312 = vst [vmem:[%s229_s20 + $0x48] sm:$0xff] %v311_v9 }
  0x24   : > { %314 = vst [vmem:[%s229_s20 + $0x50] sm:$0xff] %v313_v10  ;;  %316 = vst [vmem:[%s229_s20 + $0x58] sm:$0xff] %v315_v11  ;;  %v317_v12 = vld [vmem:[%s1753_s19 + $0xc0] sm:$0xff]  ;;  %v319_v13 = vld [vmem:[%s1753_s19 + $0xd0] sm:$0xff] }
  0x25   : > { %v321_v14 = vld [vmem:[%s1753_s19 + $0xe0] sm:$0xff]  ;;  %318 = vst [vmem:[%s229_s20 + $0x60] sm:$0xff] %v317_v12  ;;  %320 = vst [vmem:[%s229_s20 + $0x68] sm:$0xff] %v319_v13  ;;  %v323_v15 = vld [vmem:[%s1753_s19 + $0xf0] sm:$0xff] }
  0x26   : > { %322 = vst [vmem:[%s229_s20 + $0x70] sm:$0xff] %v321_v14  ;;  %324 = vst [vmem:[%s229_s20 + $0x78] sm:$0xff] %v323_v15 }
  0x27 PF: > { %p1342_p7 = scmp.ge.s32.totalorder %s1654_s27, 1  ;;  %p355_p8 = scmp.lt.s32.totalorder %s1654_s27, 9 }
  0x29   : > { %p356_p9 = pnand %p1342_p7, %p355_p8 }
  0x2a   : > { %s362_s30 = sand.u32 (!%p356_p9), 1, %s1630_s21   ;;  %s1344_s7 = sshll.u32 (!%p356_p9), %s1642_s24, 4 }
  0x2b   : > { %359 = sbr.rel (%p356_p9) target bundleno = 677 (0x2a5), region = 78  ;;  %s1343_s8 = sshll.u32 (!%p356_p9), %s362_s30, 7 }
  0x2c   : > { %p408_p10 = scmp.lt.s32.totalorder (!%p356_p9), %s1344_s7, 63  ;;  %s1346_s9 = sshll.u32 (!%p356_p9), %s1638_s23, 1 }
  0x2d   : > { %p414_p11 = scmp.lt.s32.totalorder (!%p356_p9), %s1346_s9, 3  ;;  %s1347_s11 = sshll.u32 (!%p356_p9), %s1638_s23, 5 }
  0x2e   : > { %p419_p12 = scmp.lt.s32.totalorder (!%p356_p9), %s1347_s11, 63  ;;  %p1351_p13 = scmp.ne.s32.totalorder (!%p356_p9), %s1638_s23, 0 }
  0x32   : > { %s2015_s7 = smov (!%p408_p10, %s1344_s7), 63  ;;  %s2017_s9 = smov (!%p414_p11, %s1346_s9), 3 }
  0x33   : > { %s1345_s12 = sshll.u32 %s2015_s7, 3  ;;  %s1350_s16 = sshll.u32 %s2015_s7, 2  ;;  %vm435_vm0 = vcmask (!%p1351_p13), 130048   ;;  %v1656_v16 = vmov (!%p1351_p13), 0.0  }
  0x34   : > { %s1780_s15 = scalar_lea.vmem %s1991_s1, %s1345_s12  ;;  %s2019_s11 = smov (!%p419_p12, %s1347_s11), 63  ;;  %436 = vst.msk [vmem:[#allocation2] sm:$0xff] (!%p1351_p13), %vm435_vm0, %v1656_v16  ;;  %437 = vst.msk [vmem:[#allocation2 + $0x8] sm:$0xff] (!%p1351_p13), %vm435_vm0, %v1656_v16 }
  0x35   : > { %s416_s17 = scalar_lea.vmem %s1992_s2, %s2017_s9  ;;  %s1791_s20 = scalar_lea.vmem %s1996_s6, %s1350_s16  ;;  %438 = vst.msk [vmem:[#allocation2 + $0x10] sm:$0xff] (!%p1351_p13), %vm435_vm0, %v1656_v16  ;;  %439 = vst.msk [vmem:[#allocation2 + $0x18] sm:$0xff] (!%p1351_p13), %vm435_vm0, %v1656_v16 }
  0x36   : > { %s1348_s30 = sshll.u32 %s2019_s11, 2  ;;  %s1798_s7 = scalar_lea.vmem [#allocation3], %s1343_s8  ;;  %440 = vst.msk [vmem:[#allocation2 + $0x20] sm:$0xff] (!%p1351_p13), %vm435_vm0, %v1656_v16  ;;  %441 = vst.msk [vmem:[#allocation2 + $0x28] sm:$0xff] (!%p1351_p13), %vm435_vm0, %v1656_v16 }
  0x37   : > { %s1796_s12 = scalar_lea.vmem %s1993_s3, %s1348_s30  ;;  %434 = sbr.rel (%p1351_p13) target bundleno = 62 (0x3e), region = 86  ;;  %442 = vst.msk [vmem:[#allocation2 + $0x30] sm:$0xff] (!%p1351_p13), %vm435_vm0, %v1656_v16  ;;  %443 = vst.msk [vmem:[#allocation2 + $0x38] sm:$0xff] (!%p1351_p13), %vm435_vm0, %v1656_v16 }
  0x38   : > { %444 = vst.msk [vmem:[#allocation2 + $0x40] sm:$0xff] (!%p1351_p13), %vm435_vm0, %v1656_v16  ;;  %445 = vst.msk [vmem:[#allocation2 + $0x48] sm:$0xff] (!%p1351_p13), %vm435_vm0, %v1656_v16 }
  0x39   : > { %446 = vst.msk [vmem:[#allocation2 + $0x50] sm:$0xff] (!%p1351_p13), %vm435_vm0, %v1656_v16  ;;  %447 = vst.msk [vmem:[#allocation2 + $0x58] sm:$0xff] (!%p1351_p13), %vm435_vm0, %v1656_v16 }
  0x3a   : > { %448 = vst.msk [vmem:[#allocation2 + $0x60] sm:$0xff] (!%p1351_p13), %vm435_vm0, %v1656_v16  ;;  %449 = vst.msk [vmem:[#allocation2 + $0x68] sm:$0xff] (!%p1351_p13), %vm435_vm0, %v1656_v16 }
  0x3b   : > { %450 = vst.msk [vmem:[#allocation2 + $0x70] sm:$0xff] (!%p1351_p13), %vm435_vm0, %v1656_v16  ;;  %451 = vst.msk [vmem:[#allocation2 + $0x78] sm:$0xff] (!%p1351_p13), %vm435_vm0, %v1656_v16 }
  0x3e PF: > { %v460_v17 = vld [vmem:[%s1780_s15 + $0x40] sm:$0xff]  ;;  %v1657_v19 = vmov 0   ;;  %v461_v20 = vld [vmem:[%s1780_s15 + $0x48] sm:$0xff]  ;;  %v455_v22 = vld [vmem:[%s1780_s15 + $0x18] sm:$0xff]  ;;  %v630_v50 = vlaneseq  ;;  %vm945_vm1 = vcmask 130048   ;;  %p1368_p0 = scmp.ne.s32.totalorder %s1638_s23, 1 }
  0x3f   : > { %v452_v18 = vld [vmem:[%s1780_s15] sm:$0xff]  ;;  %1582 = vset.pattern.permute.xlu1 %v1657_v19  ;;  %1581 = vset.pattern.permute.xlu0 %v1657_v19  ;;  %v453_v21 = vld [vmem:[%s1780_s15 + $0x8] sm:$0xff]  ;;  %v454_v23 = vld [vmem:[%s1780_s15 + $0x10] sm:$0xff]  ;;  %vm1206_vm2 = vcmask (!%p1368_p0), 125952  }
  0x40   : > { %558 = vperm.xlu1 %1582, %v460_v17   ;;  %518 = vperm.xlu0 %1581, %v452_v18   ;;  %v1583_v24 = vld [vmem:[%s1796_s12 + $0x40] sm:$0xff]   ;;  %v1585_v26 = vld [vmem:[%s1796_s12 + $0x48] sm:$0xff]   ;;  %v463_v27 = vld [vmem:[%s1780_s15 + $0x58] sm:$0xff]  ;;  %v631_v51 = vshrl.u32 %v630_v50, 7 }
  0x41   : > { %v1584_v25 = vld [vmem:[%s1796_s12] sm:$0xff]   ;;  %1414 = vmatprep.subr.bf16.mxu0 %v1583_v24  ;;  %1505 = vmatprep.subr.bf16.mxu1 %v1583_v24  ;;  %v1586_v28 = vld [vmem:[%s1796_s12 + $0x8] sm:$0xff]   ;;  %v462_v29 = vld [vmem:[%s1780_s15 + $0x50] sm:$0xff] }
  0x42   : > { %1415 = vmatpush3.bf16.msra.mxu0 %v1584_v25  ;;  %1513 = vmatpush3.bf16.msra.mxu1 %v1584_v25  ;;  %v1587_v30 = vld [vmem:[%s1796_s12 + $0x50] sm:$0xff]   ;;  %v457_v31 = vld [vmem:[%s1780_s15 + $0x28] sm:$0xff]  ;;  %v456_v33 = vld [vmem:[%s1780_s15 + $0x20] sm:$0xff]  ;;  %v632_v54 = vsub.s32 0, %v631_v51  ;;  %v636_v58 = vsub.s32 1, %v631_v51 }
  0x43   : > { %1416 = vmatprep.subr.bf16.mxu0 %v1585_v26  ;;  %1506 = vmatprep.subr.bf16.mxu1 %v1585_v26  ;;  %v1588_v32 = vld [vmem:[%s1796_s12 + $0x10] sm:$0xff]   ;;  %v1589_v34 = vld [vmem:[%s1796_s12 + $0x58] sm:$0xff]   ;;  %v465_v36 = vld [vmem:[%s1780_s15 + $0x68] sm:$0xff] }
  0x44   : > { %563 = vperm.xlu1 %1582, %v461_v20   ;;  %523 = vperm.xlu0 %1581, %v453_v21   ;;  %v1590_v35 = vld [vmem:[%s1796_s12 + $0x18] sm:$0xff]   ;;  %v464_v37 = vld [vmem:[%s1780_s15 + $0x60] sm:$0xff]  ;;  %v458_v41 = vld [vmem:[%s1780_s15 + $0x30] sm:$0xff] }
  0x45   : > { %v1591_v38 = vld [vmem:[%s1796_s12 + $0x60] sm:$0xff]   ;;  %v459_v40 = vld [vmem:[%s1780_s15 + $0x38] sm:$0xff]  ;;  %v1593_v42 = vld [vmem:[%s1796_s12 + $0x68] sm:$0xff]  }
  0x46   : > { %1417 = vmatpush3.bf16.msra.mxu0 %v1586_v28  ;;  %1514 = vmatpush3.bf16.msra.mxu1 %v1586_v28  ;;  %v1592_v39 = vld [vmem:[%s1796_s12 + $0x20] sm:$0xff]   ;;  %v1594_v43 = vld [vmem:[%s1796_s12 + $0x28] sm:$0xff]   ;;  %v467_v44 = vld [vmem:[%s1780_s15 + $0x78] sm:$0xff] }
  0x47   : > { %1418 = vmatprep.subr.bf16.mxu0 %v1587_v30  ;;  %1507 = vmatprep.subr.bf16.mxu1 %v1587_v30  ;;  %v466_v45 = vld [vmem:[%s1780_s15 + $0x70] sm:$0xff]  ;;  %v1597_v48 = vld [vmem:[%s1796_s12 + $0x78] sm:$0xff]   ;;  %v476_v52 = vld [vmem:[%s1798_s7 + $0x40] sm:$0xff] }
  0x48   : > { %533 = vperm.xlu1 %1582, %v455_v22   ;;  %528 = vperm.xlu0 %1581, %v454_v23   ;;  %v1595_v46 = vld [vmem:[%s1796_s12 + $0x70] sm:$0xff]   ;;  %v1598_v49 = vld [vmem:[%s1796_s12 + $0x38] sm:$0xff]   ;;  %v468_v53 = vld [vmem:[%s1798_s7] sm:$0xff]  ;;  %v500_v59 = vunpack.c.l.bf16 %v476_v52  ;;  %v501_v60 = vunpack.c.h.bf16 %v476_v52 }
  0x49   : > { %v1596_v47 = vld [vmem:[%s1796_s12 + $0x30] sm:$0xff]   ;;  %v477_v55 = vld [vmem:[%s1798_s7 + $0x48] sm:$0xff]  ;;  %v628_v57 = vld [vmem:[%s416_s17] sm:$0x3]  ;;  %v484_v62 = vunpack.c.l.bf16 %v468_v53  ;;  %v485_v63 = vunpack.c.h.bf16 %v468_v53 }
  0x4a   : > { %1419 = vmatpush3.bf16.msra.mxu0 %v1588_v32  ;;  %1515 = vmatpush3.bf16.msra.mxu1 %v1588_v32  ;;  %v469_v56 = vld [vmem:[%s1798_s7 + $0x8] sm:$0xff]  ;;  %v471_v1 = vld [vmem:[%s1798_s7 + $0x18] sm:$0xff]  ;;  %v470_v2 = vld [vmem:[%s1798_s7 + $0x10] sm:$0xff]  ;;  %v502_v3 = vunpack.c.l.bf16 %v477_v55  ;;  %v503_v4 = vunpack.c.h.bf16 %v477_v55  ;;  %v1860_v7 = vrot.slane %v628_v57, %v632_v54  ;;  %v1862_v10 = vrot.slane %v628_v57, %v636_v58 }
  0x4b   : > { %1420 = vmatprep.subr.bf16.mxu0 %v1589_v34  ;;  %1508 = vmatprep.subr.bf16.mxu1 %v1589_v34  ;;  %v486_v5 = vunpack.c.l.bf16 %v469_v56  ;;  %v487_v6 = vunpack.c.h.bf16 %v469_v56  ;;  %v490_v8 = vunpack.c.l.bf16 %v471_v1  ;;  %v491_v9 = vunpack.c.h.bf16 %v471_v1  ;;  %v479_v12 = vld [vmem:[%s1798_s7 + $0x58] sm:$0xff]  ;;  %v478_v13 = vld [vmem:[%s1798_s7 + $0x50] sm:$0xff] }
  0x4c   : > { %573 = vperm.xlu1 %1582, %v463_v27   ;;  %568 = vperm.xlu0 %1581, %v462_v29   ;;  %v489_v11 = vunpack.c.h.bf16 %v470_v2  ;;  %v488_v24 = vunpack.c.l.bf16 %v470_v2  ;;  %v506_v25 = vunpack.c.l.bf16 %v479_v12  ;;  %v507_v26 = vunpack.c.h.bf16 %v479_v12 }
  0x4d   : > { %v504_v27 = vunpack.c.l.bf16 %v478_v13 }
  0x4e   : > { %1421 = vmatpush3.bf16.msra.mxu0 %v1590_v35  ;;  %1516 = vmatpush3.bf16.msra.mxu1 %v1590_v35 }
  0x4f   : > { %1422 = vmatprep.subr.bf16.mxu0 %v1591_v38  ;;  %1509 = vmatprep.subr.bf16.mxu1 %v1591_v38 }
  0x50   : > { %543 = vperm.xlu1 %1582, %v457_v31   ;;  %538 = vperm.xlu0 %1581, %v456_v33  }
  0x52   : > { %1423 = vmatpush3.bf16.msra.mxu0 %v1592_v39  ;;  %1517 = vmatpush3.bf16.msra.mxu1 %v1592_v39 }
  0x53   : > { %1424 = vmatprep.subr.bf16.mxu0 %v1593_v42  ;;  %1510 = vmatprep.subr.bf16.mxu1 %v1593_v42  ;;  %v473_v42 = vld [vmem:[%s1798_s7 + $0x28] sm:$0xff] }
  0x54   : > { %583 = vperm.xlu1 %1582, %v465_v36   ;;  %578 = vperm.xlu0 %1581, %v464_v37   ;;  %v494_v53 = vunpack.c.l.bf16 %v473_v42  ;;  %v495_v54 = vunpack.c.h.bf16 %v473_v42 }
  0x56   : > { %1425 = vmatpush3.bf16.msra.mxu0 %v1594_v43  ;;  %1518 = vmatpush3.bf16.msra.mxu1 %v1594_v43 }
  0x57   : > { %1426 = vmatprep.subr.bf16.mxu0 %v1595_v46  ;;  %1511 = vmatprep.subr.bf16.mxu1 %v1595_v46 }
  0x58   : > { %553 = vperm.xlu1 %1582, %v459_v40   ;;  %548 = vperm.xlu0 %1581, %v458_v41   ;;  %v505_v41 = vunpack.c.h.bf16 %v478_v13 }
  0x5a   : > { %1427 = vmatpush3.bf16.msra.mxu0 %v1596_v47  ;;  %1519 = vmatpush3.bf16.msra.mxu1 %v1596_v47  ;;  %v472_v47 = vld [vmem:[%s1798_s7 + $0x20] sm:$0xff] }
  0x5b   : > { %1428 = vmatprep.subr.bf16.mxu0 %v1597_v48  ;;  %1512 = vmatprep.subr.bf16.mxu1 %v1597_v48  ;;  %v493_v58 = vunpack.c.h.bf16 %v472_v47 }
  0x5c   : > { %593 = vperm.xlu1 %1582, %v467_v44   ;;  %588 = vperm.xlu0 %1581, %v466_v45  }
  0x5e   : > { %1429 = vmatpush3.bf16.msra.mxu0 %v1598_v49  ;;  %1520 = vmatpush3.bf16.msra.mxu1 %v1598_v49 }
  0xbf   : > { %v559_v61 = vpop.permute.xlu1 %558  ;;  %v519_v0 = vpop.permute.xlu0 %518 }
  0xc0   : > { %v612_v14 = vmul.f32 %v559_v61, %v500_v59  ;;  %v613_v15 = vmul.f32 %v559_v61, %v501_v60  ;;  %v596_v16 = vmul.f32 %v519_v0, %v484_v62  ;;  %v597_v17 = vmul.f32 %v519_v0, %v485_v63  ;;  %v481_v59 = vld [vmem:[%s1798_s7 + $0x68] sm:$0xff]  ;;  %v480_v0 = vld [vmem:[%s1798_s7 + $0x60] sm:$0xff] }
  0xc1   : > { %v492_v63 = vunpack.c.l.bf16 %v472_v47  ;;  %v511_v13 = vunpack.c.h.bf16 %v481_v59 }
  0xc2   : > { %v656_v32 = vmul.f32 %v1860_v7, %v612_v14  ;;  %v640_v33 = vmul.f32 %v1860_v7, %v596_v16  ;;  %v641_v36 = vmul.f32 %v1862_v10, %v597_v17  ;;  %v657_v37 = vmul.f32 %v1862_v10, %v613_v15  ;;  %v475_v15 = vld [vmem:[%s1798_s7 + $0x38] sm:$0xff] }
  0xc3   : > { %v564_v18 = vpop.permute.xlu1 %563  ;;  %v524_v19 = vpop.permute.xlu0 %523  ;;  %v508_v14 = vunpack.c.l.bf16 %v480_v0 }
  0xc4   : > { %v614_v20 = vmul.f32 %v564_v18, %v502_v3  ;;  %v615_v21 = vmul.f32 %v564_v18, %v503_v4  ;;  %v598_v22 = vmul.f32 %v524_v19, %v486_v5  ;;  %v599_v23 = vmul.f32 %v524_v19, %v487_v6 }
  0xc5   : > { %v509_v19 = vunpack.c.h.bf16 %v480_v0 }
  0xc6   : > { %v658_v28 = vmul.f32 %v1860_v7, %v614_v20  ;;  %v642_v29 = vmul.f32 %v1860_v7, %v598_v22  ;;  %v643_v30 = vmul.f32 %v1862_v10, %v599_v23  ;;  %v659_v31 = vmul.f32 %v1862_v10, %v615_v21  ;;  %v474_v20 = vld [vmem:[%s1798_s7 + $0x30] sm:$0xff] }
  0xc7   : > { %v534_v34 = vpop.permute.xlu1 %533  ;;  %v529_v35 = vpop.permute.xlu0 %528 }
  0xc8   : > { %v602_v38 = vmul.f32 %v534_v34, %v490_v8  ;;  %v603_v39 = vmul.f32 %v534_v34, %v491_v9  ;;  %v601_v40 = vmul.f32 %v529_v35, %v489_v11  ;;  %v673_v43 = vpack.c.bf16 %v643_v30, %v641_v36 }
  0xc9   : > { %v681_v44 = vpack.c.bf16 %v659_v31, %v657_v37  ;;  %v680_v45 = vpack.c.bf16 %v658_v28, %v656_v32  ;;  %v672_v46 = vpack.c.bf16 %v642_v29, %v640_v33  ;;  %v600_v49 = vmul.f32 %v529_v35, %v488_v24  ;;  %v483_v33 = vld [vmem:[%s1798_s7 + $0x78] sm:$0xff] }
  0xca   : > { %v647_v48 = vmul.f32 %v1862_v10, %v603_v39  ;;  %v645_v50 = vmul.f32 %v1862_v10, %v601_v40  ;;  %864 = vmatprep.mubr.bf16.mxu0 %v673_v43  ;;  %v646_v60 = vmul.f32 %v1860_v7, %v602_v38  ;;  %v510_v9 = vunpack.c.l.bf16 %v481_v59  ;;  %v482_v38 = vld [vmem:[%s1798_s7 + $0x70] sm:$0xff] }
  0xcb   : > { %896 = vmatprep.mubr.bf16.mxu1 %v681_v44  ;;  %v574_v51 = vpop.permute.xlu1 %573  ;;  %v569_v52 = vpop.permute.xlu0 %568  ;;  %865 = vmatmul.mubr.bf16.vlgmr.msra.gmra.mrb[0].mxu0 %v672_v46  ;;  %v644_v1 = vmul.f32 %v1860_v7, %v600_v49  ;;  %v499_v28 = vunpack.c.h.bf16 %v475_v15  ;;  %v497_v32 = vunpack.c.h.bf16 %v474_v20  ;;  %v496_v37 = vunpack.c.l.bf16 %v474_v20 }
  0xcc   : > { %897 = vmatmul.mubr.bf16.vlgmr.msra.gmra.mrb[0].mxu1 %v680_v45  ;;  %v618_v55 = vmul.f32 %v574_v51, %v506_v25  ;;  %v619_v56 = vmul.f32 %v574_v51, %v507_v26  ;;  %v616_v57 = vmul.f32 %v569_v52, %v504_v27  ;;  %v617_v61 = vmul.f32 %v569_v52, %v505_v41 }
  0xcd   : > { %v675_v62 = vpack.c.bf16 %v647_v48, %v645_v50  ;;  %v674_v24 = vpack.c.bf16 %v646_v60, %v644_v1  ;;  %v498_v27 = vunpack.c.l.bf16 %v475_v15  ;;  %v514_v46 = vunpack.c.l.bf16 %v483_v33  ;;  %v688_v15 = vld [vmem:[#allocation2] sm:$0xff] }
  0xce   : > { %v662_v2 = vmul.f32 %v1860_v7, %v618_v55  ;;  %v663_v3 = vmul.f32 %v1862_v10, %v619_v56  ;;  %v660_v4 = vmul.f32 %v1860_v7, %v616_v57  ;;  %v661_v5 = vmul.f32 %v1862_v10, %v617_v61 }
  0xcf   : > { %872 = vmatprep.mubr.bf16.mxu0 %v675_v62  ;;  %v544_v6 = vpop.permute.xlu1 %543  ;;  %v539_v8 = vpop.permute.xlu0 %538  ;;  %v515_v49 = vunpack.c.h.bf16 %v483_v33  ;;  %v512_v50 = vunpack.c.l.bf16 %v482_v38  ;;  %v690_v33 = vld [vmem:[#allocation2 + $0x10] sm:$0xff] }
  0xd0   : > { %v607_v11 = vmul.f32 %v544_v6, %v495_v54  ;;  %v605_v12 = vmul.f32 %v539_v8, %v493_v58  ;;  %v606_v16 = vmul.f32 %v544_v6, %v494_v53  ;;  %v683_v17 = vpack.c.bf16 %v663_v3, %v661_v5 }
  0xd1   : > { %v682_v18 = vpack.c.bf16 %v662_v2, %v660_v4  ;;  %v604_v22 = vmul.f32 %v539_v8, %v492_v63  ;;  %v513_v54 = vunpack.c.h.bf16 %v482_v38 }
  0xd2   : > { %v651_v21 = vmul.f32 %v1862_v10, %v607_v11  ;;  %v649_v23 = vmul.f32 %v1862_v10, %v605_v12  ;;  %904 = vmatprep.mubr.bf16.mxu1 %v683_v17  ;;  %v650_v34 = vmul.f32 %v1860_v7, %v606_v16  ;;  %v696_v17 = vld [vmem:[#allocation2 + $0x40] sm:$0xff] }
  0xd3   : > { %v584_v25 = vpop.permute.xlu1 %583  ;;  %v579_v26 = vpop.permute.xlu0 %578  ;;  %873 = vmatmul.mubr.bf16.gmra.mrb[4].mxu0 %v674_v24  ;;  %v648_v39 = vmul.f32 %v1860_v7, %v604_v22 }
  0xd4   : > { %v622_v29 = vmul.f32 %v584_v25, %v510_v9  ;;  %v623_v30 = vmul.f32 %v584_v25, %v511_v13  ;;  %905 = vmatmul.mubr.bf16.gmra.mrb[4].mxu1 %v682_v18  ;;  %v620_v31 = vmul.f32 %v579_v26, %v508_v14  ;;  %v621_v35 = vmul.f32 %v579_v26, %v509_v19 }
  0xd5   : > { %v677_v36 = vpack.c.bf16 %v651_v21, %v649_v23  ;;  %v676_v58 = vpack.c.bf16 %v650_v34, %v648_v39  ;;  %v697_v23 = vld [vmem:[#allocation2 + $0x48] sm:$0xff] }
  0xd6   : > { %v666_v40 = vmul.f32 %v1860_v7, %v622_v29  ;;  %v667_v41 = vmul.f32 %v1862_v10, %v623_v30  ;;  %v664_v42 = vmul.f32 %v1860_v7, %v620_v31  ;;  %v665_v43 = vmul.f32 %v1862_v10, %v621_v35  ;;  %v698_v35 = vld [vmem:[#allocation2 + $0x50] sm:$0xff] }
  0xd7   : > { %880 = vmatprep.mubr.bf16.mxu0 %v677_v36  ;;  %v554_v44 = vpop.permute.xlu1 %553  ;;  %v549_v45 = vpop.permute.xlu0 %548 }
  0xd8   : > { %v611_v47 = vmul.f32 %v554_v44, %v499_v28  ;;  %v609_v48 = vmul.f32 %v549_v45, %v497_v32  ;;  %v610_v51 = vmul.f32 %v554_v44, %v498_v27  ;;  %v685_v52 = vpack.c.bf16 %v667_v41, %v665_v43  ;;  %v691_v41 = vld [vmem:[#allocation2 + $0x18] sm:$0xff] }
  0xd9   : > { %v684_v53 = vpack.c.bf16 %v666_v40, %v664_v42  ;;  %v608_v56 = vmul.f32 %v549_v45, %v496_v37  ;;  %v699_v43 = vld [vmem:[#allocation2 + $0x58] sm:$0xff] }
  0xda   : > { %v655_v55 = vmul.f32 %v1862_v10, %v611_v47  ;;  %v653_v57 = vmul.f32 %v1862_v10, %v609_v48  ;;  %912 = vmatprep.mubr.bf16.mxu1 %v685_v52  ;;  %v654_v0 = vmul.f32 %v1860_v7, %v610_v51 }
  0xdb   : > { %v594_v59 = vpop.permute.xlu1 %593  ;;  %v589_v60 = vpop.permute.xlu0 %588  ;;  %881 = vmatmul.mubr.bf16.gmra.mrb[8].mxu0 %v676_v58  ;;  %v652_v3 = vmul.f32 %v1860_v7, %v608_v56 }
  0xdc   : > { %v626_v61 = vmul.f32 %v594_v59, %v514_v46  ;;  %v627_v62 = vmul.f32 %v594_v59, %v515_v49  ;;  %913 = vmatmul.mubr.bf16.gmra.mrb[8].mxu1 %v684_v53  ;;  %v624_v63 = vmul.f32 %v589_v60, %v512_v50  ;;  %v625_v1 = vmul.f32 %v589_v60, %v513_v54  ;;  %v692_v53 = vld [vmem:[#allocation2 + $0x20] sm:$0xff] }
  0xdd   : > { %v679_v2 = vpack.c.bf16 %v655_v55, %v653_v57  ;;  %v678_v12 = vpack.c.bf16 %v654_v0, %v652_v3  ;;  %v700_v55 = vld [vmem:[#allocation2 + $0x60] sm:$0xff] }
  0xde   : > { %v670_v4 = vmul.f32 %v1860_v7, %v626_v61  ;;  %v671_v5 = vmul.f32 %v1862_v10, %v627_v62  ;;  %v668_v6 = vmul.f32 %v1860_v7, %v624_v63  ;;  %v669_v8 = vmul.f32 %v1862_v10, %v625_v1  ;;  %v689_v7 = vld [vmem:[#allocation2 + $0x8] sm:$0xff] }
  0xdf   : > { %888 = vmatprep.mubr.bf16.mxu0 %v679_v2  ;;  %v693_v61 = vld [vmem:[#allocation2 + $0x28] sm:$0xff] }
  0xe0   : > { %v686_v9 = vpack.c.bf16 %v670_v4, %v668_v6  ;;  %v687_v11 = vpack.c.bf16 %v671_v5, %v669_v8  ;;  %v701_v63 = vld [vmem:[#allocation2 + $0x68] sm:$0xff] }
  0xe2   : > { %920 = vmatprep.mubr.bf16.mxu1 %v687_v11  ;;  %v694_v11 = vld [vmem:[#allocation2 + $0x30] sm:$0xff] }
  0xe3   : > { %889 = vmatmul.mubr.bf16.gmra.mrb[12].mxu0 %v678_v12 }
  0xe4   : > { %921 = vmatmul.mubr.bf16.gmra.mrb[12].mxu1 %v686_v9 }
 0x19e   : > { %v1430_v13 = vpop.f32.mrb[0].mxu0 }
 0x19f   : > { %v1454_v14 = vpop.f32.mrb[0].mxu1  ;;  %v1431_v16 = vpop.f32.mrb[1].mxu0 }
 0x1a0   : > { %v1455_v18 = vpop.f32.mrb[1].mxu1  ;;  %v1432_v19 = vadd.f32 %v1431_v16, %v1430_v13  ;;  %v1433_v21 = vpop.f32.mrb[2].mxu0  ;;  %v702_v13 = vld [vmem:[#allocation2 + $0x70] sm:$0xff] }
 0x1a1   : > { %v1456_v20 = vadd.f32 %v1455_v18, %v1454_v14  ;;  %v1457_v22 = vpop.f32.mrb[2].mxu1  ;;  %v1434_v10 = vpop.f32.mrb[3].mxu0 }
 0x1a2   : > { %v1458_v24 = vpop.f32.mrb[3].mxu1  ;;  %v929_v25 = vadd.f32 %v1432_v19, %v688_v15  ;;  %v1435_v27 = vadd.f32 %v1434_v10, %v1433_v21  ;;  %v695_v19 = vld [vmem:[#allocation2 + $0x38] sm:$0xff] }
 0x1a3   : > { %v937_v26 = vadd.f32 %v1456_v20, %v696_v17  ;;  %v1459_v28 = vadd.f32 %v1458_v24, %v1457_v22  ;;  %v703_v21 = vld [vmem:[#allocation2 + $0x78] sm:$0xff] }
 0x1a4   : > { %946 = vst.msk [vmem:[#allocation2] sm:$0xff] %vm945_vm1, %v929_v25  ;;  %v930_v29 = vadd.f32 %v1435_v27, %v689_v7  ;;  %v1599_v27 = vld [vmem:[%s1995_s5] sm:$0xff] (!%p1368_p0)  }
 0x1a5   : > { %954 = vst.msk [vmem:[#allocation2 + $0x40] sm:$0xff] %vm945_vm1, %v937_v26  ;;  %v938_v30 = vadd.f32 %v1459_v28, %v697_v23  ;;  %1487 = vmatprep.subr.bf16.mxu0 (!%p1368_p0), %v1599_v27  ;;  %1521 = vmatprep.subr.bf16.mxu1 (!%p1368_p0), %v1599_v27 }
 0x1a6   : > { %947 = vst.msk [vmem:[#allocation2 + $0x8] sm:$0xff] %vm945_vm1, %v930_v29  ;;  %v1436_v31 = vpop.f32.mrb[4].mxu0  ;;  %1488 = vmatpush3.bf16.msra.mxu0 (!%p1368_p0), %v1599_v27  ;;  %1522 = vmatpush3.bf16.msra.mxu1 (!%p1368_p0), %v1599_v27 }
 0x1a7   : > { %955 = vst.msk [vmem:[#allocation2 + $0x48] sm:$0xff] %vm945_vm1, %v938_v30  ;;  %v1460_v32 = vpop.f32.mrb[4].mxu1  ;;  %v1437_v34 = vpop.f32.mrb[5].mxu0  ;;  %v1369_v30 = vld [vmem:[%s1994_s4] ss:$0 sm:$0xff] (!%p1368_p0) }
 0x1a8   : > { %v1461_v36 = vpop.f32.mrb[5].mxu1  ;;  %v1438_v37 = vadd.f32 %v1437_v34, %v1436_v31  ;;  %v1439_v39 = vpop.f32.mrb[6].mxu0 }
 0x1a9   : > { %v1462_v38 = vadd.f32 %v1461_v36, %v1460_v32  ;;  %v1463_v40 = vpop.f32.mrb[6].mxu1  ;;  %v1440_v42 = vpop.f32.mrb[7].mxu0 }
 0x1aa   : > { %v1464_v44 = vpop.f32.mrb[7].mxu1  ;;  %v931_v45 = vadd.f32 %v1438_v37, %v690_v33  ;;  %v1441_v47 = vadd.f32 %v1440_v42, %v1439_v39 }
 0x1ab   : > { %v939_v46 = vadd.f32 %v1462_v38, %v698_v35  ;;  %v1465_v48 = vadd.f32 %v1464_v44, %v1463_v40  ;;  %v966_v28 = vld [vmem:[#allocation2] sm:$0xff] (!%p1368_p0) }
 0x1ac   : > { %948 = vst.msk [vmem:[#allocation2 + $0x10] sm:$0xff] %vm945_vm1, %v931_v45  ;;  %v932_v49 = vadd.f32 %v1441_v47, %v691_v41  ;;  %v989_v31 = vadd.f32 (!%p1368_p0), %v1369_v30, %v966_v28  ;;  %v974_v33 = vld [vmem:[#allocation2 + $0x40] sm:$0xff] (!%p1368_p0) }
 0x1ad   : > { %956 = vst.msk [vmem:[#allocation2 + $0x50] sm:$0xff] %vm945_vm1, %v939_v46  ;;  %v940_v50 = vadd.f32 %v1465_v48, %v699_v43  ;;  %v967_v29 = vld [vmem:[#allocation2 + $0x8] sm:$0xff] (!%p1368_p0)  ;;  %v997_v36 = vadd.f32 (!%p1368_p0), %v1369_v30, %v974_v33 }
 0x1ae   : > { %949 = vst.msk [vmem:[#allocation2 + $0x18] sm:$0xff] %vm945_vm1, %v932_v49  ;;  %v1442_v51 = vpop.f32.mrb[8].mxu0  ;;  %v990_v32 = vadd.f32 (!%p1368_p0), %v1369_v30, %v967_v29  ;;  %v975_v34 = vld [vmem:[#allocation2 + $0x48] sm:$0xff] (!%p1368_p0) }
 0x1af   : > { %957 = vst.msk [vmem:[#allocation2 + $0x58] sm:$0xff] %vm945_vm1, %v940_v50  ;;  %v1466_v52 = vpop.f32.mrb[8].mxu1  ;;  %v1443_v54 = vpop.f32.mrb[9].mxu0  ;;  %v998_v37 = vadd.f32 (!%p1368_p0), %v1369_v30, %v975_v34 }
 0x1b0   : > { %v1467_v56 = vpop.f32.mrb[9].mxu1  ;;  %v1444_v57 = vadd.f32 %v1443_v54, %v1442_v51  ;;  %v1445_v59 = vpop.f32.mrb[10].mxu0  ;;  %v1005_v42 = vpack.c.bf16 (!%p1368_p0), %v990_v32, %v989_v31 }
 0x1b1   : > { %v1468_v58 = vadd.f32 %v1467_v56, %v1466_v52  ;;  %v1469_v60 = vpop.f32.mrb[10].mxu1  ;;  %v1446_v62 = vpop.f32.mrb[11].mxu0  ;;  %v1009_v49 = vpack.c.bf16 (!%p1368_p0), %v998_v37, %v997_v36 }
 0x1b2   : > { %v1470_v0 = vpop.f32.mrb[11].mxu1  ;;  %v933_v1 = vadd.f32 %v1444_v57, %v692_v53  ;;  %v1447_v3 = vadd.f32 %v1446_v62, %v1445_v59  ;;  %1489 = vmatprep.mubr.msk.bf16.mxu0 (!%p1368_p0), %vm945_vm1, %v1005_v42 }
 0x1b3   : > { %v941_v2 = vadd.f32 %v1468_v58, %v700_v55  ;;  %v1471_v4 = vadd.f32 %v1470_v0, %v1469_v60  ;;  %v968_v35 = vld [vmem:[#allocation2 + $0x10] sm:$0xff] (!%p1368_p0)  ;;  %1497 = vmatprep.mubr.msk.bf16.mxu1 (!%p1368_p0), %vm945_vm1, %v1009_v49 }
 0x1b4   : > { %950 = vst.msk [vmem:[#allocation2 + $0x20] sm:$0xff] %vm945_vm1, %v933_v1  ;;  %v934_v5 = vadd.f32 %v1447_v3, %v693_v61  ;;  %v991_v39 = vadd.f32 (!%p1368_p0), %v1369_v30, %v968_v35  ;;  %v976_v40 = vld [vmem:[#allocation2 + $0x50] sm:$0xff] (!%p1368_p0) }
 0x1b5   : > { %958 = vst.msk [vmem:[#allocation2 + $0x60] sm:$0xff] %vm945_vm1, %v941_v2  ;;  %v942_v6 = vadd.f32 %v1471_v4, %v701_v63  ;;  %v969_v38 = vld [vmem:[#allocation2 + $0x18] sm:$0xff] (!%p1368_p0)  ;;  %v999_v44 = vadd.f32 (!%p1368_p0), %v1369_v30, %v976_v40 }
 0x1b6   : > { %951 = vst.msk [vmem:[#allocation2 + $0x28] sm:$0xff] %vm945_vm1, %v934_v5  ;;  %v1448_v8 = vpop.f32.mrb[12].mxu0  ;;  %v977_v41 = vld [vmem:[#allocation2 + $0x58] sm:$0xff] (!%p1368_p0)  ;;  %v992_v43 = vadd.f32 (!%p1368_p0), %v1369_v30, %v969_v38 }
 0x1b7   : > { %959 = vst.msk [vmem:[#allocation2 + $0x68] sm:$0xff] %vm945_vm1, %v942_v6  ;;  %v1472_v9 = vpop.f32.mrb[12].mxu1  ;;  %v1449_v12 = vpop.f32.mrb[13].mxu0  ;;  %v1000_v45 = vadd.f32 (!%p1368_p0), %v1369_v30, %v977_v41 }
 0x1b8   : > { %v1473_v14 = vpop.f32.mrb[13].mxu1  ;;  %v1450_v15 = vadd.f32 %v1449_v12, %v1448_v8  ;;  %v1451_v17 = vpop.f32.mrb[14].mxu0  ;;  %v1006_v56 = vpack.c.bf16 (!%p1368_p0), %v992_v43, %v991_v39 }
 0x1b9   : > { %v1474_v16 = vadd.f32 %v1473_v14, %v1472_v9  ;;  %v1475_v18 = vpop.f32.mrb[14].mxu1  ;;  %v1452_v20 = vpop.f32.mrb[15].mxu0  ;;  %965 = sbr.rel (%p1368_p0) target bundleno = 677 (0x2a5), region = 90  ;;  %v1010_v57 = vpack.c.bf16 (!%p1368_p0), %v1000_v45, %v999_v44 }
 0x1ba   : > { %v1476_v22 = vpop.f32.mrb[15].mxu1  ;;  %v935_v7 = vadd.f32 %v1450_v15, %v694_v11  ;;  %v1453_v23 = vadd.f32 %v1452_v20, %v1451_v17  ;;  %1490 = vmatmul.mubr.msk.bf16.vlgmr.msra.gmra.mrb[0].mxu0 (!%p1368_p0), %vm945_vm1, %v1006_v56 }
 0x1bb   : > { %v943_v10 = vadd.f32 %v1474_v16, %v702_v13  ;;  %v1477_v24 = vadd.f32 %v1476_v22, %v1475_v18  ;;  %v970_v46 = vld [vmem:[#allocation2 + $0x20] sm:$0xff] (!%p1368_p0)  ;;  %1498 = vmatmul.mubr.msk.bf16.vlgmr.msra.gmra.mrb[0].mxu1 (!%p1368_p0), %vm945_vm1, %v1010_v57 }
 0x1bc   : > { %952 = vst.msk [vmem:[#allocation2 + $0x30] sm:$0xff] %vm945_vm1, %v935_v7  ;;  %v936_v25 = vadd.f32 %v1453_v23, %v695_v19  ;;  %v978_v48 = vld [vmem:[#allocation2 + $0x60] sm:$0xff] (!%p1368_p0)  ;;  %v993_v50 = vadd.f32 (!%p1368_p0), %v1369_v30, %v970_v46 }
 0x1bd   : > { %960 = vst.msk [vmem:[#allocation2 + $0x70] sm:$0xff] %vm945_vm1, %v943_v10  ;;  %v944_v26 = vadd.f32 %v1477_v24, %v703_v21  ;;  %v971_v47 = vld [vmem:[#allocation2 + $0x28] sm:$0xff] (!%p1368_p0)  ;;  %v1001_v53 = vadd.f32 (!%p1368_p0), %v1369_v30, %v978_v48 }
 0x1be   : > { %953 = vst.msk [vmem:[#allocation2 + $0x38] sm:$0xff] %vm945_vm1, %v936_v25  ;;  %v994_v51 = vadd.f32 (!%p1368_p0), %v1369_v30, %v971_v47  ;;  %v979_v52 = vld [vmem:[#allocation2 + $0x68] sm:$0xff] (!%p1368_p0) }
 0x1bf   : > { %961 = vst.msk [vmem:[#allocation2 + $0x78] sm:$0xff] %vm945_vm1, %v944_v26  ;;  %v1002_v58 = vadd.f32 (!%p1368_p0), %v1369_v30, %v979_v52 }
 0x1c0   : > { %v1007_v61 = vpack.c.bf16 %v994_v51, %v993_v50 }
 0x1c1   : > { %v1011_v0 = vpack.c.bf16 %v1002_v58, %v1001_v53 }
 0x1c2   : > { %1493 = vmatprep.mubr.msk.bf16.mxu0 %vm945_vm1, %v1007_v61 }
 0x1c3   : > { %v972_v54 = vld [vmem:[#allocation2 + $0x30] sm:$0xff]  ;;  %1501 = vmatprep.mubr.msk.bf16.mxu1 %vm945_vm1, %v1011_v0 }
 0x1c4   : > { %v980_v59 = vld [vmem:[#allocation2 + $0x70] sm:$0xff]  ;;  %v995_v62 = vadd.f32 %v1369_v30, %v972_v54 }
 0x1c5   : > { %v973_v55 = vld [vmem:[#allocation2 + $0x38] sm:$0xff]  ;;  %v1003_v1 = vadd.f32 %v1369_v30, %v980_v59 }
 0x1c6   : > { %v981_v60 = vld [vmem:[#allocation2 + $0x78] sm:$0xff]  ;;  %v996_v63 = vadd.f32 %v1369_v30, %v973_v55 }
 0x1c7   : > { %v1004_v2 = vadd.f32 %v1369_v30, %v981_v60 }
 0x1c8   : > { %v1008_v3 = vpack.c.bf16 %v996_v63, %v995_v62 }
 0x1c9   : > { %v1012_v4 = vpack.c.bf16 %v1004_v2, %v1003_v1 }
 0x1ca   : > { %1494 = vmatmul.mubr.msk.bf16.gmra.mrb[4].mxu0 %vm945_vm1, %v1008_v3 }
 0x1cb   : > { %1502 = vmatmul.mubr.msk.bf16.gmra.mrb[4].mxu1 %vm945_vm1, %v1012_v4 }
 0x28d   : > { %v1491_v5 = vpop.f32.mrb[0].mxu0 }
 0x28e   : > { %v1499_v6 = vpop.f32.mrb[0].mxu1  ;;  %v1400_v8 = vpack.c.bf16 %v1491_v5, %v1491_v5  ;;  %v1079_v11 = vpop.f32.mrb[1].mxu0 }
 0x28f   : > { %v1408_v9 = vpack.c.bf16 %v1499_v6, %v1499_v6  ;;  %v1111_v12 = vpop.f32.mrb[1].mxu1  ;;  %v1398_v13 = vpack.c.bf16 %v1079_v11, %v1079_v11  ;;  %v1492_v15 = vpop.f32.mrb[2].mxu0 }
 0x290   : > { %v1406_v14 = vpack.c.bf16 %v1111_v12, %v1111_v12  ;;  %v1500_v16 = vpop.f32.mrb[2].mxu1  ;;  %1209 = vst.msk [vmem:[%s1791_s20 + $0x8] sm:$0xf] %vm1206_vm2, %v1400_v8  ;;  %v1401_v17 = vpack.c.bf16 %v1492_v15, %v1492_v15  ;;  %v1082_v19 = vpop.f32.mrb[3].mxu0 }
 0x291   : > { %1217 = vst.msk [vmem:[%s1791_s20 + $0x28] sm:$0xf] %vm1206_vm2, %v1408_v9  ;;  %v1409_v18 = vpack.c.bf16 %v1500_v16, %v1500_v16  ;;  %v1114_v20 = vpop.f32.mrb[3].mxu1  ;;  %1207 = vst.msk [vmem:[%s1791_s20] sm:$0xf] %vm1206_vm2, %v1398_v13  ;;  %v1399_v21 = vpack.c.bf16 %v1082_v19, %v1082_v19 }
 0x292   : > { %1215 = vst.msk [vmem:[%s1791_s20 + $0x20] sm:$0xf] %vm1206_vm2, %v1406_v14  ;;  %v1407_v22 = vpack.c.bf16 %v1114_v20, %v1114_v20  ;;  %1210 = vst.msk [vmem:[%s1791_s20 + $0xc] sm:$0xf] %vm1206_vm2, %v1401_v17 }
 0x293   : > { %1218 = vst.msk [vmem:[%s1791_s20 + $0x2c] sm:$0xf] %vm1206_vm2, %v1409_v18  ;;  %1208 = vst.msk [vmem:[%s1791_s20 + $0x4] sm:$0xf] %vm1206_vm2, %v1399_v21 }
 0x294   : > { %1216 = vst.msk [vmem:[%s1791_s20 + $0x24] sm:$0xf] %vm1206_vm2, %v1407_v22 }
 0x29d   : > { %v1495_v7 = vpop.f32.mrb[4].mxu0 }
 0x29e   : > { %v1503_v10 = vpop.f32.mrb[4].mxu1  ;;  %v1404_v23 = vpack.c.bf16 %v1495_v7, %v1495_v7  ;;  %v1095_v25 = vpop.f32.mrb[5].mxu0 }
 0x29f   : > { %v1412_v24 = vpack.c.bf16 %v1503_v10, %v1503_v10  ;;  %v1127_v26 = vpop.f32.mrb[5].mxu1  ;;  %v1402_v27 = vpack.c.bf16 %v1095_v25, %v1095_v25  ;;  %v1496_v29 = vpop.f32.mrb[6].mxu0 }
 0x2a0   : > { %v1410_v28 = vpack.c.bf16 %v1127_v26, %v1127_v26  ;;  %v1504_v30 = vpop.f32.mrb[6].mxu1  ;;  %1213 = vst.msk [vmem:[%s1791_s20 + $0x18] sm:$0xf] %vm1206_vm2, %v1404_v23  ;;  %v1405_v31 = vpack.c.bf16 %v1496_v29, %v1496_v29  ;;  %v1098_v33 = vpop.f32.mrb[7].mxu0 }
 0x2a1   : > { %1221 = vst.msk [vmem:[%s1791_s20 + $0x38] sm:$0xf] %vm1206_vm2, %v1412_v24  ;;  %v1413_v32 = vpack.c.bf16 %v1504_v30, %v1504_v30  ;;  %v1130_v34 = vpop.f32.mrb[7].mxu1  ;;  %1211 = vst.msk [vmem:[%s1791_s20 + $0x10] sm:$0xf] %vm1206_vm2, %v1402_v27  ;;  %v1403_v35 = vpack.c.bf16 %v1098_v33, %v1098_v33 }
 0x2a2   : > { %1219 = vst.msk [vmem:[%s1791_s20 + $0x30] sm:$0xf] %vm1206_vm2, %v1410_v28  ;;  %v1411_v36 = vpack.c.bf16 %v1130_v34, %v1130_v34  ;;  %1214 = vst.msk [vmem:[%s1791_s20 + $0x1c] sm:$0xf] %vm1206_vm2, %v1405_v31 }
 0x2a3   : > { %1222 = vst.msk [vmem:[%s1791_s20 + $0x3c] sm:$0xf] %vm1206_vm2, %v1413_v32  ;;  %1212 = vst.msk [vmem:[%s1791_s20 + $0x14] sm:$0xf] %vm1206_vm2, %v1403_v35 }
 0x2a4   : > { %1220 = vst.msk [vmem:[%s1791_s20 + $0x34] sm:$0xf] %vm1206_vm2, %v1411_v36 }
 0x2a5 PF: > { %s16_s27 = sadd.s32 1, %s1654_s27   ;;  %s2001_s14 = sld [smem:[#allocation4_spill]] }
 0x2a6   : > { %p13_p1 = scmp.ge.s32.totalorder %s16_s27, 10   ;;  %s2002_s21 = smov %s1634_s22 }
 0x2a7   : > { %s2003_s22 = smov %s1744_s10  ;;  %s2004_s23 = smov %s1646_s25 }
 0x2a8   : > { %s2005_s24 = smov %s1650_s26  ;;  %s2006_s25 = smov %s2009_s28 }
 0x2a9   :  { %15 = sbr.rel (!%p13_p1) target bundleno = 6 (0x6), region = 134 }
 0x2ab   : > { %s2007_s26 = smov %s2001_s14 }

</bundles_post_ra>
